<compile_context>
chip_gen: v5e
topology: v5e:2x2
jax: 0.10.0
libtpu: 0.0.40
codegen_flags: <defaults>
</compile_context>

<pallas_src>
import math
import functools

import jax
import jax.numpy as jnp
from jax import lax
from jax.experimental import pallas as pl
from jax.experimental.pallas import tpu as pltpu


# ----------------------------- configuration --------------------------------
class Config:
    vocab_size = 256          # lane-friendly toy vocab (multiple of 128)
    context_length = 64
    n_layer = 2
    n_head = 4
    n_embd = 128              # lane-friendly


# ----------------------------- helpers ---------------------------------------
def _pick_tile(dim, candidates):
    for c in candidates:
        if dim % c == 0:
            return c
    return dim                 # full extent is always a legal block


def _gelu_tanh(x):
    # GELU with tanh approximation (matches nn.GELU(approximate='tanh'))
    c = math.sqrt(2.0 / math.pi)
    return 0.5 * x * (1.0 + jnp.tanh(c * (x + 0.044715 * x * x * x)))


# ------------------- fused [LN] + matmul + bias + [act] + [residual] ---------
def _fused_linear_kernel(*refs, has_ln, has_bias, has_residual, activation,
                         transpose_w, eps):
    it = iter(refs)
    x_ref = next(it)
    g_ref = next(it) if has_ln else None
    bt_ref = next(it) if has_ln else None
    w_ref = next(it)
    b_ref = next(it) if has_bias else None
    r_ref = next(it) if has_residual else None
    o_ref = next(it)

    x = x_ref[...].astype(jnp.float32)                    # (tm, K) f32 VPU math
    if has_ln:
        mean = jnp.mean(x, axis=-1, keepdims=True)
        xc = x - mean
        var = jnp.mean(xc * xc, axis=-1, keepdims=True)   # biased var (PyTorch LN)
        x = (xc * lax.rsqrt(var + eps)) * g_ref[...] + bt_ref[...]

    xb = x.astype(jnp.bfloat16)                           # bf16 into the MXU
    w = w_ref[...]
    if transpose_w:
        # x @ w^T without materializing the transpose: contract last dims.
        acc = lax.dot_general(xb, w, (((1,), (1,)), ((), ())),
                              preferred_element_type=jnp.float32)
    else:
        acc = jnp.dot(xb, w, preferred_element_type=jnp.float32)
    if has_bias:
        acc = acc + b_ref[...]
    if activation == "gelu_tanh":
        acc = _gelu_tanh(acc)
    if has_residual:
        acc = acc + r_ref[...].astype(jnp.float32)
    o_ref[...] = acc.astype(o_ref.dtype)


def fused_linear(x, w, *, bias=None, ln_gamma=None, ln_beta=None,
                 residual=None, activation=None, transpose_w=False, eps=1e-5):
    """y = [residual +] act( LN(x) @ (w or w^T) + bias ).

    x: (M, K) f32.  w: (K, N) (or (N, K) if transpose_w) -- cast/stored bf16.
    Tiled (tm, tn) on a 2-D parallel grid; K kept whole (fits VMEM for GPT sizes).
    """
    M, K = x.shape
    N = w.shape[0] if transpose_w else w.shape[1]
    tm = _pick_tile(M, (256, 128, 64, 32, 16, 8))
    tn = _pick_tile(N, (256, 128))     # 256-wide tiles feed the 256x256 MXU (v6e/v7x)

    has_ln = ln_gamma is not None
    has_bias = bias is not None
    has_residual = residual is not None

    args = [x]
    in_specs = [pl.BlockSpec((tm, K), lambda i, j: (i, 0))]
    if has_ln:
        args += [ln_gamma.reshape(1, K).astype(jnp.float32),
                 ln_beta.reshape(1, K).astype(jnp.float32)]
        in_specs += [pl.BlockSpec((1, K), lambda i, j: (0, 0)),
                     pl.BlockSpec((1, K), lambda i, j: (0, 0))]
    wb = w if w.dtype == jnp.bfloat16 else w.astype(jnp.bfloat16)
    args.append(wb)
    if transpose_w:
        in_specs.append(pl.BlockSpec((tn, K), lambda i, j: (j, 0)))
    else:
        in_specs.append(pl.BlockSpec((K, tn), lambda i, j: (0, j)))
    if has_bias:
        args.append(bias.reshape(1, N).astype(jnp.float32))
        in_specs.append(pl.BlockSpec((1, tn), lambda i, j: (0, j)))
    if has_residual:
        args.append(residual)
        in_specs.append(pl.BlockSpec((tm, tn), lambda i, j: (i, j)))

    kernel = functools.partial(
        _fused_linear_kernel, has_ln=has_ln, has_bias=has_bias,
        has_residual=has_residual, activation=activation,
        transpose_w=transpose_w, eps=eps)

    return pl.pallas_call(
        kernel,
        out_shape=jax.ShapeDtypeStruct((M, N), jnp.float32),
        grid_spec=pltpu.PrefetchScalarGridSpec(
            num_scalar_prefetch=0,
            grid=(M // tm, N // tn),
            in_specs=in_specs,
            out_specs=pl.BlockSpec((tm, tn), lambda i, j: (i, j)),
        ),
        compiler_params=pltpu.CompilerParams(
            dimension_semantics=("parallel", "parallel")),
    )(*args)


# ----------------------------- causal attention ------------------------------
def _causal_attn_kernel(qkv_ref, o_ref, *, n_head, scale):
    # qkv_ref: (1, T, 3D) for one batch element; o_ref: (1, T, D) lane-dense.
    T = qkv_ref.shape[1]
    D = o_ref.shape[2]
    Dh = D // n_head

    row = lax.broadcasted_iota(jnp.int32, (T, T), 0)
    col = lax.broadcasted_iota(jnp.int32, (T, T), 1)
    causal = row >= col

    for h in range(n_head):                      # static head loop (small H)
        qh = qkv_ref[0, :, pl.ds(h * Dh, Dh)].astype(jnp.bfloat16)          # (T, Dh)
        kh = qkv_ref[0, :, pl.ds(D + h * Dh, Dh)].astype(jnp.bfloat16)      # (T, Dh)
        vh = qkv_ref[0, :, pl.ds(2 * D + h * Dh, Dh)].astype(jnp.bfloat16)  # (T, Dh)

        # q @ k^T with no materialized transpose: contract last dims of both.
        s = lax.dot_general(qh, kh, (((1,), (1,)), ((), ())),
                            preferred_element_type=jnp.float32) * scale     # (T, T)
        s = jnp.where(causal, s, jnp.float32(-1e30))
        s = s - jnp.max(s, axis=-1, keepdims=True)
        p = jnp.exp(s)
        p = p * pl.reciprocal(jnp.sum(p, axis=-1, keepdims=True), approx=True)

        yh = jnp.dot(p.astype(jnp.bfloat16), vh,
                     preferred_element_type=jnp.float32)                    # (T, Dh)
        o_ref[0, :, pl.ds(h * Dh, Dh)] = yh.astype(o_ref.dtype)


def causal_attention_pallas(qkv, B, T, n_head):
    """qkv: (B*T, 3D) fused projection -> attention output (B, T, D)."""
    M, threeD = qkv.shape
    D = threeD // 3
    scale = 1.0 / math.sqrt(D // n_head)
    kernel = functools.partial(_causal_attn_kernel, n_head=n_head, scale=scale)
    return pl.pallas_call(
        kernel,
        out_shape=jax.ShapeDtypeStruct((B, T, D), jnp.float32),
        grid_spec=pltpu.PrefetchScalarGridSpec(
            num_scalar_prefetch=0,
            grid=(B,),
            in_specs=[pl.BlockSpec((1, T, threeD), lambda b: (b, 0, 0))],
            out_specs=pl.BlockSpec((1, T, D), lambda b: (b, 0, 0)),
        ),
        compiler_params=pltpu.CompilerParams(dimension_semantics=("parallel",)),
    )(qkv.reshape(B, T, threeD))


# ----------------------------- parameter init -------------------------------
def init_params(cfg: Config, key):
    D = cfg.n_embd
    V = cfg.vocab_size
    ks = iter(jax.random.split(key, 2 + cfg.n_layer * 4))

    def nrm(k, shape, std=0.02, dtype=jnp.float32):
        return (std * jax.random.normal(k, shape)).astype(dtype)

    params = {
        "wte": nrm(next(ks), (V, D)),                      # tied with lm_head
        "wpe": nrm(next(ks), (cfg.context_length, D)),
        "ln_f_g": jnp.ones((D,), jnp.float32),
        "ln_f_b": jnp.zeros((D,), jnp.float32),
        "blocks": [],
    }
    proj_std = 0.02 * (2 * cfg.n_layer) ** -0.5
    for _ in range(cfg.n_layer):
        blk = {
            "ln1_g": jnp.ones((D,), jnp.float32),
            "ln1_b": jnp.zeros((D,), jnp.float32),
            # matmul weights stored in bf16 (MXU-native; halves HBM traffic)
            "attn_w": nrm(next(ks), (D, 3 * D), dtype=jnp.bfloat16),
            "attn_b": jnp.zeros((3 * D,), jnp.float32),
            "attn_proj_w": nrm(next(ks), (D, D), std=proj_std, dtype=jnp.bfloat16),
            "attn_proj_b": jnp.zeros((D,), jnp.float32),
            "ln2_g": jnp.ones((D,), jnp.float32),
            "ln2_b": jnp.zeros((D,), jnp.float32),
            "fc_w": nrm(next(ks), (D, 4 * D), dtype=jnp.bfloat16),
            "fc_b": jnp.zeros((4 * D,), jnp.float32),
            "mlp_proj_w": nrm(next(ks), (4 * D, D), std=proj_std, dtype=jnp.bfloat16),
            "mlp_proj_b": jnp.zeros((D,), jnp.float32),
        }
        params["blocks"].append(blk)
    return params


# ----------------------------- forward pass ---------------------------------
def block_forward(x2d, blk, B, T, n_head):
    M, D = x2d.shape

    # LN1 fused into the QKV projection (one kernel, one HBM pass over x).
    qkv = fused_linear(x2d, blk["attn_w"], bias=blk["attn_b"],
                       ln_gamma=blk["ln1_g"], ln_beta=blk["ln1_b"])      # (M, 3D)

    # Causal attention over the whole qkv slab (no split / head transposes).
    y = causal_attention_pallas(qkv, B, T, n_head)                       # (B, T, D)

    # Attention output projection with the residual add fused in.
    x2d = fused_linear(y.reshape(M, D), blk["attn_proj_w"],
                       bias=blk["attn_proj_b"], residual=x2d)

    # LN2 fused into fc, tanh-GELU fused into the epilogue.
    h = fused_linear(x2d, blk["fc_w"], bias=blk["fc_b"],
                     ln_gamma=blk["ln2_g"], ln_beta=blk["ln2_b"],
                     activation="gelu_tanh")

    # MLP output projection with the residual add fused in.
    x2d = fused_linear(h, blk["mlp_proj_w"], bias=blk["mlp_proj_b"],
                       residual=x2d)
    return x2d


def gpt_forward(params, indices, targets, cfg: Config):
    B, T = indices.shape
    D = cfg.n_embd
    V = cfg.vocab_size

    tok_emb = jnp.take(params["wte"], indices, axis=0)       # (B, T, D) glue gather
    pos_emb = params["wpe"][:T]                              # (T, D)
    x = (tok_emb + pos_emb[None, :, :]).reshape(B * T, D).astype(jnp.float32)

    for blk in params["blocks"]:
        x = block_forward(x, blk, B, T, cfg.n_head)

    # ln_f fused into the lm_head matmul; weight tied to wte, used untransposed
    # (contraction on last dims), no bias DMA.
    logits = fused_linear(x, params["wte"], ln_gamma=params["ln_f_g"],
                          ln_beta=params["ln_f_b"], transpose_w=True)    # (M, V)
    logits = logits.reshape(B, T, V)

    loss = None
    if targets is not None:
        # cross-entropy glue (plain JAX reduction over small (B*T, V))
        logp = jax.nn.log_softmax(logits.reshape(-1, V), axis=-1)
        loss = -jnp.mean(jnp.take_along_axis(logp, targets.reshape(-1, 1), axis=-1))
    return logits, loss


# --------------------------------- main --------------------------------------
if __name__ == "__main__":
    cfg = Config()
    key = jax.random.PRNGKey(0)
    kparams, kidx, ktgt = jax.random.split(key, 3)

    B, T = 2, 8
    params = init_params(cfg, kparams)
    indices = jax.random.randint(kidx, (B, T), 0, cfg.vocab_size, dtype=jnp.int32)
    targets = jax.random.randint(ktgt, (B, T), 0, cfg.vocab_size, dtype=jnp.int32)

    fwd = jax.jit(functools.partial(gpt_forward, cfg=cfg))
    logits, loss = fwd(params, indices, targets)
    jax.block_until_ready((logits, loss))

    assert logits.shape == (B, T, cfg.vocab_size)
    assert bool(jnp.isfinite(loss))
    print("KERNEL_OK")
</pallas_src>

<mosaic_0001>
module attributes {stable_mosaic.version = 11 : i64} {
  func.func @_fused_linear_kernel(%arg0: i32, %arg1: i32, %arg2: memref<16x128xf32, #tpu.memory_space<vmem>>, %arg3: memref<128x128xbf16, #tpu.memory_space<vmem>>, %arg4: memref<1x128xf32, #tpu.memory_space<vmem>>, %arg5: memref<16x128xf32, #tpu.memory_space<vmem>>, %arg6: memref<16x128xf32, #tpu.memory_space<vmem>>) attributes {dimension_semantics = [#tpu.dimension_semantics<parallel>, #tpu.dimension_semantics<parallel>], iteration_bounds = array<i64: 1, 1>, scalar_prefetch = 0 : i64, scratch_operands = 0 : i64, tpu.core_type = #tpu.core_type<tc>, window_params = [{transform_indices = @transform_0, window_bounds = array<i64: 16, 128>}, {transform_indices = @transform_1, window_bounds = array<i64: 128, 128>}, {transform_indices = @transform_2, window_bounds = array<i64: 1, 128>}, {transform_indices = @transform_3, window_bounds = array<i64: 16, 128>}, {transform_indices = @transform_4, window_bounds = array<i64: 16, 128>}]} {
    %c0 = arith.constant 0 : index
    %c0_0 = arith.constant 0 : index
    %0 = vector.load %arg2[%c0, %c0_0] : memref<16x128xf32, #tpu.memory_space<vmem>>, vector<16x128xf32>
    %1 = arith.truncf %0 : vector<16x128xf32> to vector<16x128xbf16>
    %c0_1 = arith.constant 0 : index
    %c0_2 = arith.constant 0 : index
    %2 = vector.load %arg3[%c0_1, %c0_2] : memref<128x128xbf16, #tpu.memory_space<vmem>>, vector<128x128xbf16>
    %cst = arith.constant dense<0.000000e+00> : vector<16x128xf32>
    %3 = tpu.matmul %1, %2, %cst {dimension_numbers = #tpu.dot_dimension_numbers<[1], [0], [0], [1], [0, 0, 1, 1], [], []>} : vector<16x128xbf16>, vector<128x128xbf16>, vector<16x128xf32> -> vector<16x128xf32>
    %c0_3 = arith.constant 0 : index
    %c0_4 = arith.constant 0 : index
    %4 = vector.load %arg4[%c0_3, %c0_4] : memref<1x128xf32, #tpu.memory_space<vmem>>, vector<1x128xf32>
    %5 = vector.broadcast %4 : vector<1x128xf32> to vector<16x128xf32>
    %6 = arith.addf %3, %5 : vector<16x128xf32>
    %c0_5 = arith.constant 0 : index
    %c0_6 = arith.constant 0 : index
    %7 = vector.load %arg5[%c0_5, %c0_6] : memref<16x128xf32, #tpu.memory_space<vmem>>, vector<16x128xf32>
    %8 = arith.addf %6, %7 : vector<16x128xf32>
    %c0_7 = arith.constant 0 : index
    %c0_8 = arith.constant 0 : index
    %9 = vector.load %arg6[%c0_7, %c0_8] : memref<16x128xf32, #tpu.memory_space<vmem>>, vector<16x128xf32>
    tpu.vector_store %arg6[%c0_7, %c0_8], %8 {strides = array<i32>} : memref<16x128xf32, #tpu.memory_space<vmem>>, vector<16x128xf32>,
    return
  }
  func.func @transform_0(%arg0: i32, %arg1: i32) -> (i32, i32) {
    %c0_i32 = arith.constant 0 : i32
    %c0_i32_0 = arith.constant 0 : i32
    return %arg0, %c0_i32 : i32, i32
  }
  func.func @transform_1(%arg0: i32, %arg1: i32) -> (i32, i32) {
    %c0_i32 = arith.constant 0 : i32
    %c0_i32_0 = arith.constant 0 : i32
    return %c0_i32, %arg1 : i32, i32
  }
  func.func @transform_2(%arg0: i32, %arg1: i32) -> (i32, i32) {
    %c0_i32 = arith.constant 0 : i32
    %c0_i32_0 = arith.constant 0 : i32
    return %c0_i32, %arg1 : i32, i32
  }
  func.func @transform_3(%arg0: i32, %arg1: i32) -> (i32, i32) {
    %c0_i32 = arith.constant 0 : i32
    return %arg0, %arg1 : i32, i32
  }
  func.func @transform_4(%arg0: i32, %arg1: i32) -> (i32, i32) {
    %c0_i32 = arith.constant 0 : i32
    return %arg0, %arg1 : i32, i32
  }
}

module attributes {stable_mosaic.version = 11 : i64} {
  func.func @_fused_linear_kernel(%arg0: i32, %arg1: i32, %arg2: memref<16x128xf32, #tpu.memory_space<vmem>>, %arg3: memref<1x128xf32, #tpu.memory_space<vmem>>, %arg4: memref<1x128xf32, #tpu.memory_space<vmem>>, %arg5: memref<128x128xbf16, #tpu.memory_space<vmem>>, %arg6: memref<1x128xf32, #tpu.memory_space<vmem>>, %arg7: memref<16x128xf32, #tpu.memory_space<vmem>>) attributes {dimension_semantics = [#tpu.dimension_semantics<parallel>, #tpu.dimension_semantics<parallel>], iteration_bounds = array<i64: 1, 3>, scalar_prefetch = 0 : i64, scratch_operands = 0 : i64, tpu.core_type = #tpu.core_type<tc>, window_params = [{transform_indices = @transform_0, window_bounds = array<i64: 16, 128>}, {pipeline_mode = #tpu.pipeline_mode<synchronous>, transform_indices = @transform_1, window_bounds = array<i64: 1, 128>}, {pipeline_mode = #tpu.pipeline_mode<synchronous>, transform_indices = @transform_2, window_bounds = array<i64: 1, 128>}, {transform_indices = @transform_3, window_bounds = array<i64: 128, 128>}, {transform_indices = @transform_4, window_bounds = array<i64: 1, 128>}, {transform_indices = @transform_5, window_bounds = array<i64: 16, 128>}]} {
    %c0 = arith.constant 0 : index
    %c0_0 = arith.constant 0 : index
    %0 = vector.load %arg2[%c0, %c0_0] : memref<16x128xf32, #tpu.memory_space<vmem>>, vector<16x128xf32>
    %cst = arith.constant dense<0.000000e+00> : vector<16xf32>
    %1 = vector.multi_reduction <add>, %0, %cst [1] : vector<16x128xf32> to vector<16xf32>
    %2 = vector.shape_cast %1 : vector<16xf32> to vector<16x1xf32>
    %cst_1 = arith.constant 1.280000e+02 : f32
    %3 = vector.broadcast %cst_1 : f32 to vector<16x1xf32>
    %4 = arith.divf %2, %3 : vector<16x1xf32>
    %5 = vector.broadcast %4 : vector<16x1xf32> to vector<16x128xf32>
    %6 = arith.subf %0, %5 : vector<16x128xf32>
    %7 = arith.mulf %6, %6 : vector<16x128xf32>
    %cst_2 = arith.constant dense<0.000000e+00> : vector<16xf32>
    %8 = vector.multi_reduction <add>, %7, %cst_2 [1] : vector<16x128xf32> to vector<16xf32>
    %9 = vector.shape_cast %8 : vector<16xf32> to vector<16x1xf32>
    %cst_3 = arith.constant 1.280000e+02 : f32
    %10 = vector.broadcast %cst_3 : f32 to vector<16x1xf32>
    %11 = arith.divf %9, %10 : vector<16x1xf32>
    %cst_4 = arith.constant 9.99999974E-6 : f32
    %12 = vector.broadcast %cst_4 : f32 to vector<16x1xf32>
    %13 = arith.addf %11, %12 : vector<16x1xf32>
    %14 = math.rsqrt %13 : vector<16x1xf32>
    %15 = vector.broadcast %14 : vector<16x1xf32> to vector<16x128xf32>
    %16 = arith.mulf %6, %15 : vector<16x128xf32>
    %c0_5 = arith.constant 0 : index
    %c0_6 = arith.constant 0 : index
    %17 = vector.load %arg3[%c0_5, %c0_6] : memref<1x128xf32, #tpu.memory_space<vmem>>, vector<1x128xf32>
    %18 = vector.broadcast %17 : vector<1x128xf32> to vector<16x128xf32>
    %19 = arith.mulf %16, %18 : vector<16x128xf32>
    %c0_7 = arith.constant 0 : index
    %c0_8 = arith.constant 0 : index
    %20 = vector.load %arg4[%c0_7, %c0_8] : memref<1x128xf32, #tpu.memory_space<vmem>>, vector<1x128xf32>
    %21 = vector.broadcast %20 : vector<1x128xf32> to vector<16x128xf32>
    %22 = arith.addf %19, %21 : vector<16x128xf32>
    %23 = arith.truncf %22 : vector<16x128xf32> to vector<16x128xbf16>
    %c0_9 = arith.constant 0 : index
    %c0_10 = arith.constant 0 : index
    %24 = vector.load %arg5[%c0_9, %c0_10] : memref<128x128xbf16, #tpu.memory_space<vmem>>, vector<128x128xbf16>
    %cst_11 = arith.constant dense<0.000000e+00> : vector<16x128xf32>
    %25 = tpu.matmul %23, %24, %cst_11 {dimension_numbers = #tpu.dot_dimension_numbers<[1], [0], [0], [1], [0, 0, 1, 1], [], []>} : vector<16x128xbf16>, vector<128x128xbf16>, vector<16x128xf32> -> vector<16x128xf32>
    %c0_12 = arith.constant 0 : index
    %c0_13 = arith.constant 0 : index
    %26 = vector.load %arg6[%c0_12, %c0_13] : memref<1x128xf32, #tpu.memory_space<vmem>>, vector<1x128xf32>
    %27 = vector.broadcast %26 : vector<1x128xf32> to vector<16x128xf32>
    %28 = arith.addf %25, %27 : vector<16x128xf32>
    %c0_14 = arith.constant 0 : index
    %c0_15 = arith.constant 0 : index
    %29 = vector.load %arg7[%c0_14, %c0_15] : memref<16x128xf32, #tpu.memory_space<vmem>>, vector<16x128xf32>
    tpu.vector_store %arg7[%c0_14, %c0_15], %28 {strides = array<i32>} : memref<16x128xf32, #tpu.memory_space<vmem>>, vector<16x128xf32>,
    return
  }
  func.func @transform_0(%arg0: i32, %arg1: i32) -> (i32, i32) {
    %c0_i32 = arith.constant 0 : i32
    %c0_i32_0 = arith.constant 0 : i32
    return %arg0, %c0_i32 : i32, i32
  }
  func.func @transform_1(%arg0: i32, %arg1: i32) -> (i32, i32) {
    %c0_i32 = arith.constant 0 : i32
    %c0_i32_0 = arith.constant 0 : i32
    %c0_i32_1 = arith.constant 0 : i32
    return %c0_i32, %c0_i32_0 : i32, i32
  }
  func.func @transform_2(%arg0: i32, %arg1: i32) -> (i32, i32) {
    %c0_i32 = arith.constant 0 : i32
    %c0_i32_0 = arith.constant 0 : i32
    %c0_i32_1 = arith.constant 0 : i32
    return %c0_i32, %c0_i32_0 : i32, i32
  }
  func.func @transform_3(%arg0: i32, %arg1: i32) -> (i32, i32) {
    %c0_i32 = arith.constant 0 : i32
    %c0_i32_0 = arith.constant 0 : i32
    return %c0_i32, %arg1 : i32, i32
  }
  func.func @transform_4(%arg0: i32, %arg1: i32) -> (i32, i32) {
    %c0_i32 = arith.constant 0 : i32
    %c0_i32_0 = arith.constant 0 : i32
    return %c0_i32, %arg1 : i32, i32
  }
  func.func @transform_5(%arg0: i32, %arg1: i32) -> (i32, i32) {
    %c0_i32 = arith.constant 0 : i32
    return %arg0, %arg1 : i32, i32
  }
}

module attributes {stable_mosaic.version = 11 : i64} {
  func.func @_causal_attn_kernel(%arg0: i32, %arg1: memref<1x8x384xf32, #tpu.memory_space<vmem>>, %arg2: memref<1x8x128xf32, #tpu.memory_space<vmem>>) attributes {dimension_semantics = [#tpu.dimension_semantics<parallel>], iteration_bounds = array<i64: 2>, scalar_prefetch = 0 : i64, scratch_operands = 0 : i64, tpu.core_type = #tpu.core_type<tc>, window_params = [{transform_indices = @transform_0, window_bounds = array<i64: 1, 8, 384>}, {transform_indices = @transform_1, window_bounds = array<i64: 1, 8, 128>}]} {
    %0 = tpu.iota {dimensions = array<i32: 0>} : vector<8x8xi32>
    %1 = tpu.iota {dimensions = array<i32: 1>} : vector<8x8xi32>
    %2 = arith.cmpi sge, %0, %1 : vector<8x8xi32>
    %c0 = arith.constant 0 : index
    %c0_0 = arith.constant 0 : index
    %c0_1 = arith.constant 0 : index
    %3 = vector.load %arg1[%c0, %c0_0, %c0_1] : memref<1x8x384xf32, #tpu.memory_space<vmem>>, vector<1x8x32xf32>
    %4 = vector.shape_cast %3 : vector<1x8x32xf32> to vector<8x32xf32>
    %5 = arith.truncf %4 : vector<8x32xf32> to vector<8x32xbf16>
    %c0_2 = arith.constant 0 : index
    %c0_3 = arith.constant 0 : index
    %c128 = arith.constant 128 : index
    %6 = vector.load %arg1[%c0_2, %c0_3, %c128] : memref<1x8x384xf32, #tpu.memory_space<vmem>>, vector<1x8x32xf32>
    %7 = vector.shape_cast %6 : vector<1x8x32xf32> to vector<8x32xf32>
    %8 = arith.truncf %7 : vector<8x32xf32> to vector<8x32xbf16>
    %c0_4 = arith.constant 0 : index
    %c0_5 = arith.constant 0 : index
    %c256 = arith.constant 256 : index
    %9 = vector.load %arg1[%c0_4, %c0_5, %c256] : memref<1x8x384xf32, #tpu.memory_space<vmem>>, vector<1x8x32xf32>
    %10 = vector.shape_cast %9 : vector<1x8x32xf32> to vector<8x32xf32>
    %11 = arith.truncf %10 : vector<8x32xf32> to vector<8x32xbf16>
    %cst = arith.constant dense<0.000000e+00> : vector<8x8xf32>
    %12 = tpu.matmul %5, %8, %cst {dimension_numbers = #tpu.dot_dimension_numbers<[1], [1], [0], [0], [0, 0, 1, 0], [], []>} : vector<8x32xbf16>, vector<8x32xbf16>, vector<8x8xf32> -> vector<8x8xf32>
    %cst_6 = arith.constant 0.176776692 : f32
    %13 = vector.broadcast %cst_6 : f32 to vector<8x8xf32>
    %14 = arith.mulf %12, %13 : vector<8x8xf32>
    %cst_7 = arith.constant -1.000000e+30 : f32
    %15 = vector.broadcast %cst_7 : f32 to vector<8x8xf32>
    %16 = arith.select %2, %14, %15 : vector<8x8xi1>, vector<8x8xf32>
    %cst_8 = arith.constant dense<0xFF800000> : vector<8xf32>
    %17 = vector.multi_reduction <maximumf>, %16, %cst_8 [1] : vector<8x8xf32> to vector<8xf32>
    %18 = vector.shape_cast %17 : vector<8xf32> to vector<8x1xf32>
    %19 = vector.broadcast %18 : vector<8x1xf32> to vector<8x8xf32>
    %20 = arith.subf %16, %19 : vector<8x8xf32>
    %21 = math.exp %20 : vector<8x8xf32>
    %cst_9 = arith.constant dense<0.000000e+00> : vector<8xf32>
    %22 = vector.multi_reduction <add>, %21, %cst_9 [1] : vector<8x8xf32> to vector<8xf32>
    %23 = vector.shape_cast %22 : vector<8xf32> to vector<8x1xf32>
    %24 = tpu.reciprocal %23 {approx = true} : vector<8x1xf32> -> vector<8x1xf32>
    %25 = vector.broadcast %24 : vector<8x1xf32> to vector<8x8xf32>
    %26 = arith.mulf %21, %25 : vector<8x8xf32>
    %27 = arith.truncf %26 : vector<8x8xf32> to vector<8x8xbf16>
    %cst_10 = arith.constant dense<0.000000e+00> : vector<8x32xf32>
    %28 = tpu.matmul %27, %11, %cst_10 {dimension_numbers = #tpu.dot_dimension_numbers<[1], [0], [0], [1], [0, 0, 1, 1], [], []>} : vector<8x8xbf16>, vector<8x32xbf16>, vector<8x32xf32> -> vector<8x32xf32>
    %c0_11 = arith.constant 0 : index
    %c0_12 = arith.constant 0 : index
    %c0_13 = arith.constant 0 : index
    %29 = vector.load %arg2[%c0_11, %c0_12, %c0_13] : memref<1x8x128xf32, #tpu.memory_space<vmem>>, vector<1x8x32xf32>
    %30 = vector.shape_cast %29 : vector<1x8x32xf32> to vector<8x32xf32>
    %31 = vector.shape_cast %28 : vector<8x32xf32> to vector<1x8x32xf32>
    tpu.vector_store %arg2[%c0_11, %c0_12, %c0_13], %31 {strides = array<i32>} : memref<1x8x128xf32, #tpu.memory_space<vmem>>, vector<1x8x32xf32>,
    %c0_14 = arith.constant 0 : index
    %c0_15 = arith.constant 0 : index
    %c32 = arith.constant 32 : index
    %32 = vector.load %arg1[%c0_14, %c0_15, %c32] : memref<1x8x384xf32, #tpu.memory_space<vmem>>, vector<1x8x32xf32>
    %33 = vector.shape_cast %32 : vector<1x8x32xf32> to vector<8x32xf32>
    %34 = arith.truncf %33 : vector<8x32xf32> to vector<8x32xbf16>
    %c0_16 = arith.constant 0 : index
    %c0_17 = arith.constant 0 : index
    %c160 = arith.constant 160 : index
    %35 = vector.load %arg1[%c0_16, %c0_17, %c160] : memref<1x8x384xf32, #tpu.memory_space<vmem>>, vector<1x8x32xf32>
    %36 = vector.shape_cast %35 : vector<1x8x32xf32> to vector<8x32xf32>
    %37 = arith.truncf %36 : vector<8x32xf32> to vector<8x32xbf16>
    %c0_18 = arith.constant 0 : index
    %c0_19 = arith.constant 0 : index
    %c288 = arith.constant 288 : index
    %38 = vector.load %arg1[%c0_18, %c0_19, %c288] : memref<1x8x384xf32, #tpu.memory_space<vmem>>, vector<1x8x32xf32>
    %39 = vector.shape_cast %38 : vector<1x8x32xf32> to vector<8x32xf32>
    %40 = arith.truncf %39 : vector<8x32xf32> to vector<8x32xbf16>
    %cst_20 = arith.constant dense<0.000000e+00> : vector<8x8xf32>
    %41 = tpu.matmul %34, %37, %cst_20 {dimension_numbers = #tpu.dot_dimension_numbers<[1], [1], [0], [0], [0, 0, 1, 0], [], []>} : vector<8x32xbf16>, vector<8x32xbf16>, vector<8x8xf32> -> vector<8x8xf32>
    %cst_21 = arith.constant 0.176776692 : f32
    %42 = vector.broadcast %cst_21 : f32 to vector<8x8xf32>
    %43 = arith.mulf %41, %42 : vector<8x8xf32>
    %cst_22 = arith.constant -1.000000e+30 : f32
    %44 = vector.broadcast %cst_22 : f32 to vector<8x8xf32>
    %45 = arith.select %2, %43, %44 : vector<8x8xi1>, vector<8x8xf32>
    %cst_23 = arith.constant dense<0xFF800000> : vector<8xf32>
    %46 = vector.multi_reduction <maximumf>, %45, %cst_23 [1] : vector<8x8xf32> to vector<8xf32>
    %47 = vector.shape_cast %46 : vector<8xf32> to vector<8x1xf32>
    %48 = vector.broadcast %47 : vector<8x1xf32> to vector<8x8xf32>
    %49 = arith.subf %45, %48 : vector<8x8xf32>
    %50 = math.exp %49 : vector<8x8xf32>
    %cst_24 = arith.constant dense<0.000000e+00> : vector<8xf32>
    %51 = vector.multi_reduction <add>, %50, %cst_24 [1] : vector<8x8xf32> to vector<8xf32>
    %52 = vector.shape_cast %51 : vector<8xf32> to vector<8x1xf32>
    %53 = tpu.reciprocal %52 {approx = true} : vector<8x1xf32> -> vector<8x1xf32>
    %54 = vector.broadcast %53 : vector<8x1xf32> to vector<8x8xf32>
    %55 = arith.mulf %50, %54 : vector<8x8xf32>
    %56 = arith.truncf %55 : vector<8x8xf32> to vector<8x8xbf16>
    %cst_25 = arith.constant dense<0.000000e+00> : vector<8x32xf32>
    %57 = tpu.matmul %56, %40, %cst_25 {dimension_numbers = #tpu.dot_dimension_numbers<[1], [0], [0], [1], [0, 0, 1, 1], [], []>} : vector<8x8xbf16>, vector<8x32xbf16>, vector<8x32xf32> -> vector<8x32xf32>
    %c0_26 = arith.constant 0 : index
    %c0_27 = arith.constant 0 : index
    %c32_28 = arith.constant 32 : index
    %58 = vector.load %arg2[%c0_26, %c0_27, %c32_28] : memref<1x8x128xf32, #tpu.memory_space<vmem>>, vector<1x8x32xf32>
    %59 = vector.shape_cast %58 : vector<1x8x32xf32> to vector<8x32xf32>
    %60 = vector.shape_cast %57 : vector<8x32xf32> to vector<1x8x32xf32>
    tpu.vector_store %arg2[%c0_26, %c0_27, %c32_28], %60 {strides = array<i32>} : memref<1x8x128xf32, #tpu.memory_space<vmem>>, vector<1x8x32xf32>,
    %c0_29 = arith.constant 0 : index
    %c0_30 = arith.constant 0 : index
    %c64 = arith.constant 64 : index
    %61 = vector.load %arg1[%c0_29, %c0_30, %c64] : memref<1x8x384xf32, #tpu.memory_space<vmem>>, vector<1x8x32xf32>
    %62 = vector.shape_cast %61 : vector<1x8x32xf32> to vector<8x32xf32>
    %63 = arith.truncf %62 : vector<8x32xf32> to vector<8x32xbf16>
    %c0_31 = arith.constant 0 : index
    %c0_32 = arith.constant 0 : index
    %c192 = arith.constant 192 : index
    %64 = vector.load %arg1[%c0_31, %c0_32, %c192] : memref<1x8x384xf32, #tpu.memory_space<vmem>>, vector<1x8x32xf32>
    %65 = vector.shape_cast %64 : vector<1x8x32xf32> to vector<8x32xf32>
    %66 = arith.truncf %65 : vector<8x32xf32> to vector<8x32xbf16>
    %c0_33 = arith.constant 0 : index
    %c0_34 = arith.constant 0 : index
    %c320 = arith.constant 320 : index
    %67 = vector.load %arg1[%c0_33, %c0_34, %c320] : memref<1x8x384xf32, #tpu.memory_space<vmem>>, vector<1x8x32xf32>
    %68 = vector.shape_cast %67 : vector<1x8x32xf32> to vector<8x32xf32>
    %69 = arith.truncf %68 : vector<8x32xf32> to vector<8x32xbf16>
    %cst_35 = arith.constant dense<0.000000e+00> : vector<8x8xf32>
    %70 = tpu.matmul %63, %66, %cst_35 {dimension_numbers = #tpu.dot_dimension_numbers<[1], [1], [0], [0], [0, 0, 1, 0], [], []>} : vector<8x32xbf16>, vector<8x32xbf16>, vector<8x8xf32> -> vector<8x8xf32>
    %cst_36 = arith.constant 0.176776692 : f32
    %71 = vector.broadcast %cst_36 : f32 to vector<8x8xf32>
    %72 = arith.mulf %70, %71 : vector<8x8xf32>
    %cst_37 = arith.constant -1.000000e+30 : f32
    %73 = vector.broadcast %cst_37 : f32 to vector<8x8xf32>
    %74 = arith.select %2, %72, %73 : vector<8x8xi1>, vector<8x8xf32>
    %cst_38 = arith.constant dense<0xFF800000> : vector<8xf32>
    %75 = vector.multi_reduction <maximumf>, %74, %cst_38 [1] : vector<8x8xf32> to vector<8xf32>
    %76 = vector.shape_cast %75 : vector<8xf32> to vector<8x1xf32>
    %77 = vector.broadcast %76 : vector<8x1xf32> to vector<8x8xf32>
    %78 = arith.subf %74, %77 : vector<8x8xf32>
    %79 = math.exp %78 : vector<8x8xf32>
    %cst_39 = arith.constant dense<0.000000e+00> : vector<8xf32>
    %80 = vector.multi_reduction <add>, %79, %cst_39 [1] : vector<8x8xf32> to vector<8xf32>
    %81 = vector.shape_cast %80 : vector<8xf32> to vector<8x1xf32>
    %82 = tpu.reciprocal %81 {approx = true} : vector<8x1xf32> -> vector<8x1xf32>
    %83 = vector.broadcast %82 : vector<8x1xf32> to vector<8x8xf32>
    %84 = arith.mulf %79, %83 : vector<8x8xf32>
    %85 = arith.truncf %84 : vector<8x8xf32> to vector<8x8xbf16>
    %cst_40 = arith.constant dense<0.000000e+00> : vector<8x32xf32>
    %86 = tpu.matmul %85, %69, %cst_40 {dimension_numbers = #tpu.dot_dimension_numbers<[1], [0], [0], [1], [0, 0, 1, 1], [], []>} : vector<8x8xbf16>, vector<8x32xbf16>, vector<8x32xf32> -> vector<8x32xf32>
    %c0_41 = arith.constant 0 : index
    %c0_42 = arith.constant 0 : index
    %c64_43 = arith.constant 64 : index
    %87 = vector.load %arg2[%c0_41, %c0_42, %c64_43] : memref<1x8x128xf32, #tpu.memory_space<vmem>>, vector<1x8x32xf32>
    %88 = vector.shape_cast %87 : vector<1x8x32xf32> to vector<8x32xf32>
    %89 = vector.shape_cast %86 : vector<8x32xf32> to vector<1x8x32xf32>
    tpu.vector_store %arg2[%c0_41, %c0_42, %c64_43], %89 {strides = array<i32>} : memref<1x8x128xf32, #tpu.memory_space<vmem>>, vector<1x8x32xf32>,
    %c0_44 = arith.constant 0 : index
    %c0_45 = arith.constant 0 : index
    %c96 = arith.constant 96 : index
    %90 = vector.load %arg1[%c0_44, %c0_45, %c96] : memref<1x8x384xf32, #tpu.memory_space<vmem>>, vector<1x8x32xf32>
    %91 = vector.shape_cast %90 : vector<1x8x32xf32> to vector<8x32xf32>
    %92 = arith.truncf %91 : vector<8x32xf32> to vector<8x32xbf16>
    %c0_46 = arith.constant 0 : index
    %c0_47 = arith.constant 0 : index
    %c224 = arith.constant 224 : index
    %93 = vector.load %arg1[%c0_46, %c0_47, %c224] : memref<1x8x384xf32, #tpu.memory_space<vmem>>, vector<1x8x32xf32>
    %94 = vector.shape_cast %93 : vector<1x8x32xf32> to vector<8x32xf32>
    %95 = arith.truncf %94 : vector<8x32xf32> to vector<8x32xbf16>
    %c0_48 = arith.constant 0 : index
    %c0_49 = arith.constant 0 : index
    %c352 = arith.constant 352 : index
    %96 = vector.load %arg1[%c0_48, %c0_49, %c352] : memref<1x8x384xf32, #tpu.memory_space<vmem>>, vector<1x8x32xf32>
    %97 = vector.shape_cast %96 : vector<1x8x32xf32> to vector<8x32xf32>
    %98 = arith.truncf %97 : vector<8x32xf32> to vector<8x32xbf16>
    %cst_50 = arith.constant dense<0.000000e+00> : vector<8x8xf32>
    %99 = tpu.matmul %92, %95, %cst_50 {dimension_numbers = #tpu.dot_dimension_numbers<[1], [1], [0], [0], [0, 0, 1, 0], [], []>} : vector<8x32xbf16>, vector<8x32xbf16>, vector<8x8xf32> -> vector<8x8xf32>
    %cst_51 = arith.constant 0.176776692 : f32
    %100 = vector.broadcast %cst_51 : f32 to vector<8x8xf32>
    %101 = arith.mulf %99, %100 : vector<8x8xf32>
    %cst_52 = arith.constant -1.000000e+30 : f32
    %102 = vector.broadcast %cst_52 : f32 to vector<8x8xf32>
    %103 = arith.select %2, %101, %102 : vector<8x8xi1>, vector<8x8xf32>
    %cst_53 = arith.constant dense<0xFF800000> : vector<8xf32>
    %104 = vector.multi_reduction <maximumf>, %103, %cst_53 [1] : vector<8x8xf32> to vector<8xf32>
    %105 = vector.shape_cast %104 : vector<8xf32> to vector<8x1xf32>
    %106 = vector.broadcast %105 : vector<8x1xf32> to vector<8x8xf32>
    %107 = arith.subf %103, %106 : vector<8x8xf32>
    %108 = math.exp %107 : vector<8x8xf32>
    %cst_54 = arith.constant dense<0.000000e+00> : vector<8xf32>
    %109 = vector.multi_reduction <add>, %108, %cst_54 [1] : vector<8x8xf32> to vector<8xf32>
    %110 = vector.shape_cast %109 : vector<8xf32> to vector<8x1xf32>
    %111 = tpu.reciprocal %110 {approx = true} : vector<8x1xf32> -> vector<8x1xf32>
    %112 = vector.broadcast %111 : vector<8x1xf32> to vector<8x8xf32>
    %113 = arith.mulf %108, %112 : vector<8x8xf32>
    %114 = arith.truncf %113 : vector<8x8xf32> to vector<8x8xbf16>
    %cst_55 = arith.constant dense<0.000000e+00> : vector<8x32xf32>
    %115 = tpu.matmul %114, %98, %cst_55 {dimension_numbers = #tpu.dot_dimension_numbers<[1], [0], [0], [1], [0, 0, 1, 1], [], []>} : vector<8x8xbf16>, vector<8x32xbf16>, vector<8x32xf32> -> vector<8x32xf32>
    %c0_56 = arith.constant 0 : index
    %c0_57 = arith.constant 0 : index
    %c96_58 = arith.constant 96 : index
    %116 = vector.load %arg2[%c0_56, %c0_57, %c96_58] : memref<1x8x128xf32, #tpu.memory_space<vmem>>, vector<1x8x32xf32>
    %117 = vector.shape_cast %116 : vector<1x8x32xf32> to vector<8x32xf32>
    %118 = vector.shape_cast %115 : vector<8x32xf32> to vector<1x8x32xf32>
    tpu.vector_store %arg2[%c0_56, %c0_57, %c96_58], %118 {strides = array<i32>} : memref<1x8x128xf32, #tpu.memory_space<vmem>>, vector<1x8x32xf32>,
    return
  }
  func.func @transform_0(%arg0: i32) -> (i32, i32, i32) {
    %c0_i32 = arith.constant 0 : i32
    %c0_i32_0 = arith.constant 0 : i32
    %c0_i32_1 = arith.constant 0 : i32
    return %arg0, %c0_i32, %c0_i32_0 : i32, i32, i32
  }
  func.func @transform_1(%arg0: i32) -> (i32, i32, i32) {
    %c0_i32 = arith.constant 0 : i32
    %c0_i32_0 = arith.constant 0 : i32
    %c0_i32_1 = arith.constant 0 : i32
    return %arg0, %c0_i32, %c0_i32_0 : i32, i32, i32
  }
}

module attributes {stable_mosaic.version = 11 : i64} {
  func.func @_fused_linear_kernel(%arg0: i32, %arg1: i32, %arg2: memref<16x128xf32, #tpu.memory_space<vmem>>, %arg3: memref<1x128xf32, #tpu.memory_space<vmem>>, %arg4: memref<1x128xf32, #tpu.memory_space<vmem>>, %arg5: memref<128x256xbf16, #tpu.memory_space<vmem>>, %arg6: memref<1x256xf32, #tpu.memory_space<vmem>>, %arg7: memref<16x256xf32, #tpu.memory_space<vmem>>) attributes {dimension_semantics = [#tpu.dimension_semantics<parallel>, #tpu.dimension_semantics<parallel>], iteration_bounds = array<i64: 1, 2>, scalar_prefetch = 0 : i64, scratch_operands = 0 : i64, tpu.core_type = #tpu.core_type<tc>, window_params = [{transform_indices = @transform_0, window_bounds = array<i64: 16, 128>}, {pipeline_mode = #tpu.pipeline_mode<synchronous>, transform_indices = @transform_1, window_bounds = array<i64: 1, 128>}, {pipeline_mode = #tpu.pipeline_mode<synchronous>, transform_indices = @transform_2, window_bounds = array<i64: 1, 128>}, {transform_indices = @transform_3, window_bounds = array<i64: 128, 256>}, {transform_indices = @transform_4, window_bounds = array<i64: 1, 256>}, {transform_indices = @transform_5, window_bounds = array<i64: 16, 256>}]} {
    %c0 = arith.constant 0 : index
    %c0_0 = arith.constant 0 : index
    %0 = vector.load %arg2[%c0, %c0_0] : memref<16x128xf32, #tpu.memory_space<vmem>>, vector<16x128xf32>
    %cst = arith.constant dense<0.000000e+00> : vector<16xf32>
    %1 = vector.multi_reduction <add>, %0, %cst [1] : vector<16x128xf32> to vector<16xf32>
    %2 = vector.shape_cast %1 : vector<16xf32> to vector<16x1xf32>
    %cst_1 = arith.constant 1.280000e+02 : f32
    %3 = vector.broadcast %cst_1 : f32 to vector<16x1xf32>
    %4 = arith.divf %2, %3 : vector<16x1xf32>
    %5 = vector.broadcast %4 : vector<16x1xf32> to vector<16x128xf32>
    %6 = arith.subf %0, %5 : vector<16x128xf32>
    %7 = arith.mulf %6, %6 : vector<16x128xf32>
    %cst_2 = arith.constant dense<0.000000e+00> : vector<16xf32>
    %8 = vector.multi_reduction <add>, %7, %cst_2 [1] : vector<16x128xf32> to vector<16xf32>
    %9 = vector.shape_cast %8 : vector<16xf32> to vector<16x1xf32>
    %cst_3 = arith.constant 1.280000e+02 : f32
    %10 = vector.broadcast %cst_3 : f32 to vector<16x1xf32>
    %11 = arith.divf %9, %10 : vector<16x1xf32>
    %cst_4 = arith.constant 9.99999974E-6 : f32
    %12 = vector.broadcast %cst_4 : f32 to vector<16x1xf32>
    %13 = arith.addf %11, %12 : vector<16x1xf32>
    %14 = math.rsqrt %13 : vector<16x1xf32>
    %15 = vector.broadcast %14 : vector<16x1xf32> to vector<16x128xf32>
    %16 = arith.mulf %6, %15 : vector<16x128xf32>
    %c0_5 = arith.constant 0 : index
    %c0_6 = arith.constant 0 : index
    %17 = vector.load %arg3[%c0_5, %c0_6] : memref<1x128xf32, #tpu.memory_space<vmem>>, vector<1x128xf32>
    %18 = vector.broadcast %17 : vector<1x128xf32> to vector<16x128xf32>
    %19 = arith.mulf %16, %18 : vector<16x128xf32>
    %c0_7 = arith.constant 0 : index
    %c0_8 = arith.constant 0 : index
    %20 = vector.load %arg4[%c0_7, %c0_8] : memref<1x128xf32, #tpu.memory_space<vmem>>, vector<1x128xf32>
    %21 = vector.broadcast %20 : vector<1x128xf32> to vector<16x128xf32>
    %22 = arith.addf %19, %21 : vector<16x128xf32>
    %23 = arith.truncf %22 : vector<16x128xf32> to vector<16x128xbf16>
    %c0_9 = arith.constant 0 : index
    %c0_10 = arith.constant 0 : index
    %24 = vector.load %arg5[%c0_9, %c0_10] : memref<128x256xbf16, #tpu.memory_space<vmem>>, vector<128x256xbf16>
    %cst_11 = arith.constant dense<0.000000e+00> : vector<16x256xf32>
    %25 = tpu.matmul %23, %24, %cst_11 {dimension_numbers = #tpu.dot_dimension_numbers<[1], [0], [0], [1], [0, 0, 1, 1], [], []>} : vector<16x128xbf16>, vector<128x256xbf16>, vector<16x256xf32> -> vector<16x256xf32>
    %c0_12 = arith.constant 0 : index
    %c0_13 = arith.constant 0 : index
    %26 = vector.load %arg6[%c0_12, %c0_13] : memref<1x256xf32, #tpu.memory_space<vmem>>, vector<1x256xf32>
    %27 = vector.broadcast %26 : vector<1x256xf32> to vector<16x256xf32>
    %28 = arith.addf %25, %27 : vector<16x256xf32>
    %cst_14 = arith.constant 5.000000e-01 : f32
    %29 = vector.broadcast %cst_14 : f32 to vector<16x256xf32>
    %30 = arith.mulf %29, %28 : vector<16x256xf32>
    %cst_15 = arith.constant 4.471500e-02 : f32
    %31 = vector.broadcast %cst_15 : f32 to vector<16x256xf32>
    %32 = arith.mulf %31, %28 : vector<16x256xf32>
    %33 = arith.mulf %32, %28 : vector<16x256xf32>
    %34 = arith.mulf %33, %28 : vector<16x256xf32>
    %35 = arith.addf %28, %34 : vector<16x256xf32>
    %cst_16 = arith.constant 0.797884583 : f32
    %36 = vector.broadcast %cst_16 : f32 to vector<16x256xf32>
    %37 = arith.mulf %36, %35 : vector<16x256xf32>
    %38 = math.tanh %37 : vector<16x256xf32>
    %cst_17 = arith.constant 1.000000e+00 : f32
    %39 = vector.broadcast %cst_17 : f32 to vector<16x256xf32>
    %40 = arith.addf %39, %38 : vector<16x256xf32>
    %41 = arith.mulf %30, %40 : vector<16x256xf32>
    %c0_18 = arith.constant 0 : index
    %c0_19 = arith.constant 0 : index
    %42 = vector.load %arg7[%c0_18, %c0_19] : memref<16x256xf32, #tpu.memory_space<vmem>>, vector<16x256xf32>
    tpu.vector_store %arg7[%c0_18, %c0_19], %41 {strides = array<i32>} : memref<16x256xf32, #tpu.memory_space<vmem>>, vector<16x256xf32>,
    return
  }
  func.func @transform_0(%arg0: i32, %arg1: i32) -> (i32, i32) {
    %c0_i32 = arith.constant 0 : i32
    %c0_i32_0 = arith.constant 0 : i32
    return %arg0, %c0_i32 : i32, i32
  }
  func.func @transform_1(%arg0: i32, %arg1: i32) -> (i32, i32) {
    %c0_i32 = arith.constant 0 : i32
    %c0_i32_0 = arith.constant 0 : i32
    %c0_i32_1 = arith.constant 0 : i32
    return %c0_i32, %c0_i32_0 : i32, i32
  }
  func.func @transform_2(%arg0: i32, %arg1: i32) -> (i32, i32) {
    %c0_i32 = arith.constant 0 : i32
    %c0_i32_0 = arith.constant 0 : i32
    %c0_i32_1 = arith.constant 0 : i32
    return %c0_i32, %c0_i32_0 : i32, i32
  }
  func.func @transform_3(%arg0: i32, %arg1: i32) -> (i32, i32) {
    %c0_i32 = arith.constant 0 : i32
    %c0_i32_0 = arith.constant 0 : i32
    return %c0_i32, %arg1 : i32, i32
  }
  func.func @transform_4(%arg0: i32, %arg1: i32) -> (i32, i32) {
    %c0_i32 = arith.constant 0 : i32
    %c0_i32_0 = arith.constant 0 : i32
    return %c0_i32, %arg1 : i32, i32
  }
  func.func @transform_5(%arg0: i32, %arg1: i32) -> (i32, i32) {
    %c0_i32 = arith.constant 0 : i32
    return %arg0, %arg1 : i32, i32
  }
}

module attributes {stable_mosaic.version = 11 : i64} {
  func.func @_fused_linear_kernel(%arg0: i32, %arg1: i32, %arg2: memref<16x512xf32, #tpu.memory_space<vmem>>, %arg3: memref<512x128xbf16, #tpu.memory_space<vmem>>, %arg4: memref<1x128xf32, #tpu.memory_space<vmem>>, %arg5: memref<16x128xf32, #tpu.memory_space<vmem>>, %arg6: memref<16x128xf32, #tpu.memory_space<vmem>>) attributes {dimension_semantics = [#tpu.dimension_semantics<parallel>, #tpu.dimension_semantics<parallel>], iteration_bounds = array<i64: 1, 1>, scalar_prefetch = 0 : i64, scratch_operands = 0 : i64, tpu.core_type = #tpu.core_type<tc>, window_params = [{transform_indices = @transform_0, window_bounds = array<i64: 16, 512>}, {transform_indices = @transform_1, window_bounds = array<i64: 512, 128>}, {transform_indices = @transform_2, window_bounds = array<i64: 1, 128>}, {transform_indices = @transform_3, window_bounds = array<i64: 16, 128>}, {transform_indices = @transform_4, window_bounds = array<i64: 16, 128>}]} {
    %c0 = arith.constant 0 : index
    %c0_0 = arith.constant 0 : index
    %0 = vector.load %arg2[%c0, %c0_0] : memref<16x512xf32, #tpu.memory_space<vmem>>, vector<16x512xf32>
    %1 = arith.truncf %0 : vector<16x512xf32> to vector<16x512xbf16>
    %c0_1 = arith.constant 0 : index
    %c0_2 = arith.constant 0 : index
    %2 = vector.load %arg3[%c0_1, %c0_2] : memref<512x128xbf16, #tpu.memory_space<vmem>>, vector<512x128xbf16>
    %cst = arith.constant dense<0.000000e+00> : vector<16x128xf32>
    %3 = tpu.matmul %1, %2, %cst {dimension_numbers = #tpu.dot_dimension_numbers<[1], [0], [0], [1], [0, 0, 1, 1], [], []>} : vector<16x512xbf16>, vector<512x128xbf16>, vector<16x128xf32> -> vector<16x128xf32>
    %c0_3 = arith.constant 0 : index
    %c0_4 = arith.constant 0 : index
    %4 = vector.load %arg4[%c0_3, %c0_4] : memref<1x128xf32, #tpu.memory_space<vmem>>, vector<1x128xf32>
    %5 = vector.broadcast %4 : vector<1x128xf32> to vector<16x128xf32>
    %6 = arith.addf %3, %5 : vector<16x128xf32>
    %c0_5 = arith.constant 0 : index
    %c0_6 = arith.constant 0 : index
    %7 = vector.load %arg5[%c0_5, %c0_6] : memref<16x128xf32, #tpu.memory_space<vmem>>, vector<16x128xf32>
    %8 = arith.addf %6, %7 : vector<16x128xf32>
    %c0_7 = arith.constant 0 : index
    %c0_8 = arith.constant 0 : index
    %9 = vector.load %arg6[%c0_7, %c0_8] : memref<16x128xf32, #tpu.memory_space<vmem>>, vector<16x128xf32>
    tpu.vector_store %arg6[%c0_7, %c0_8], %8 {strides = array<i32>} : memref<16x128xf32, #tpu.memory_space<vmem>>, vector<16x128xf32>,
    return
  }
  func.func @transform_0(%arg0: i32, %arg1: i32) -> (i32, i32) {
    %c0_i32 = arith.constant 0 : i32
    %c0_i32_0 = arith.constant 0 : i32
    return %arg0, %c0_i32 : i32, i32
  }
  func.func @transform_1(%arg0: i32, %arg1: i32) -> (i32, i32) {
    %c0_i32 = arith.constant 0 : i32
    %c0_i32_0 = arith.constant 0 : i32
    return %c0_i32, %arg1 : i32, i32
  }
  func.func @transform_2(%arg0: i32, %arg1: i32) -> (i32, i32) {
    %c0_i32 = arith.constant 0 : i32
    %c0_i32_0 = arith.constant 0 : i32
    return %c0_i32, %arg1 : i32, i32
  }
  func.func @transform_3(%arg0: i32, %arg1: i32) -> (i32, i32) {
    %c0_i32 = arith.constant 0 : i32
    return %arg0, %arg1 : i32, i32
  }
  func.func @transform_4(%arg0: i32, %arg1: i32) -> (i32, i32) {
    %c0_i32 = arith.constant 0 : i32
    return %arg0, %arg1 : i32, i32
  }
}

module attributes {stable_mosaic.version = 11 : i64} {
  func.func @_fused_linear_kernel(%arg0: i32, %arg1: i32, %arg2: memref<16x512xf32, #tpu.memory_space<vmem>>, %arg3: memref<512x128xbf16, #tpu.memory_space<vmem>>, %arg4: memref<1x128xf32, #tpu.memory_space<vmem>>, %arg5: memref<16x128xf32, #tpu.memory_space<vmem>>, %arg6: memref<16x128xf32, #tpu.memory_space<vmem>>) attributes {dimension_semantics = [#tpu.dimension_semantics<parallel>, #tpu.dimension_semantics<parallel>], iteration_bounds = array<i64: 1, 1>, scalar_prefetch = 0 : i64, scratch_operands = 0 : i64, tpu.core_type = #tpu.core_type<tc>, window_params = [{transform_indices = @transform_0, window_bounds = array<i64: 16, 512>}, {transform_indices = @transform_1, window_bounds = array<i64: 512, 128>}, {transform_indices = @transform_2, window_bounds = array<i64: 1, 128>}, {transform_indices = @transform_3, window_bounds = array<i64: 16, 128>}, {transform_indices = @transform_4, window_bounds = array<i64: 16, 128>}]} {
    %c0 = arith.constant 0 : index
    %c0_0 = arith.constant 0 : index
    %0 = vector.load %arg2[%c0, %c0_0] : memref<16x512xf32, #tpu.memory_space<vmem>>, vector<16x512xf32>
    %1 = arith.truncf %0 : vector<16x512xf32> to vector<16x512xbf16>
    %c0_1 = arith.constant 0 : index
    %c0_2 = arith.constant 0 : index
    %2 = vector.load %arg3[%c0_1, %c0_2] : memref<512x128xbf16, #tpu.memory_space<vmem>>, vector<512x128xbf16>
    %cst = arith.constant dense<0.000000e+00> : vector<16x128xf32>
    %3 = tpu.matmul %1, %2, %cst {dimension_numbers = #tpu.dot_dimension_numbers<[1], [0], [0], [1], [0, 0, 1, 1], [], []>} : vector<16x512xbf16>, vector<512x128xbf16>, vector<16x128xf32> -> vector<16x128xf32>
    %c0_3 = arith.constant 0 : index
    %c0_4 = arith.constant 0 : index
    %4 = vector.load %arg4[%c0_3, %c0_4] : memref<1x128xf32, #tpu.memory_space<vmem>>, vector<1x128xf32>
    %5 = vector.broadcast %4 : vector<1x128xf32> to vector<16x128xf32>
    %6 = arith.addf %3, %5 : vector<16x128xf32>
    %c0_5 = arith.constant 0 : index
    %c0_6 = arith.constant 0 : index
    %7 = vector.load %arg5[%c0_5, %c0_6] : memref<16x128xf32, #tpu.memory_space<vmem>>, vector<16x128xf32>
    %8 = arith.addf %6, %7 : vector<16x128xf32>
    %c0_7 = arith.constant 0 : index
    %c0_8 = arith.constant 0 : index
    %9 = vector.load %arg6[%c0_7, %c0_8] : memref<16x128xf32, #tpu.memory_space<vmem>>, vector<16x128xf32>
    tpu.vector_store %arg6[%c0_7, %c0_8], %8 {strides = array<i32>} : memref<16x128xf32, #tpu.memory_space<vmem>>, vector<16x128xf32>,
    return
  }
  func.func @transform_0(%arg0: i32, %arg1: i32) -> (i32, i32) {
    %c0_i32 = arith.constant 0 : i32
    %c0_i32_0 = arith.constant 0 : i32
    return %arg0, %c0_i32 : i32, i32
  }
  func.func @transform_1(%arg0: i32, %arg1: i32) -> (i32, i32) {
    %c0_i32 = arith.constant 0 : i32
    %c0_i32_0 = arith.constant 0 : i32
    return %c0_i32, %arg1 : i32, i32
  }
  func.func @transform_2(%arg0: i32, %arg1: i32) -> (i32, i32) {
    %c0_i32 = arith.constant 0 : i32
    %c0_i32_0 = arith.constant 0 : i32
    return %c0_i32, %arg1 : i32, i32
  }
  func.func @transform_3(%arg0: i32, %arg1: i32) -> (i32, i32) {
    %c0_i32 = arith.constant 0 : i32
    return %arg0, %arg1 : i32, i32
  }
  func.func @transform_4(%arg0: i32, %arg1: i32) -> (i32, i32) {
    %c0_i32 = arith.constant 0 : i32
    return %arg0, %arg1 : i32, i32
  }
}

module attributes {stable_mosaic.version = 11 : i64} {
  func.func @_fused_linear_kernel(%arg0: i32, %arg1: i32, %arg2: memref<16x128xf32, #tpu.memory_space<vmem>>, %arg3: memref<1x128xf32, #tpu.memory_space<vmem>>, %arg4: memref<1x128xf32, #tpu.memory_space<vmem>>, %arg5: memref<256x128xbf16, #tpu.memory_space<vmem>>, %arg6: memref<16x256xf32, #tpu.memory_space<vmem>>) attributes {dimension_semantics = [#tpu.dimension_semantics<parallel>, #tpu.dimension_semantics<parallel>], iteration_bounds = array<i64: 1, 1>, scalar_prefetch = 0 : i64, scratch_operands = 0 : i64, tpu.core_type = #tpu.core_type<tc>, window_params = [{transform_indices = @transform_0, window_bounds = array<i64: 16, 128>}, {pipeline_mode = #tpu.pipeline_mode<synchronous>, transform_indices = @transform_1, window_bounds = array<i64: 1, 128>}, {pipeline_mode = #tpu.pipeline_mode<synchronous>, transform_indices = @transform_2, window_bounds = array<i64: 1, 128>}, {transform_indices = @transform_3, window_bounds = array<i64: 256, 128>}, {transform_indices = @transform_4, window_bounds = array<i64: 16, 256>}]} {
    %c0 = arith.constant 0 : index
    %c0_0 = arith.constant 0 : index
    %0 = vector.load %arg2[%c0, %c0_0] : memref<16x128xf32, #tpu.memory_space<vmem>>, vector<16x128xf32>
    %cst = arith.constant dense<0.000000e+00> : vector<16xf32>
    %1 = vector.multi_reduction <add>, %0, %cst [1] : vector<16x128xf32> to vector<16xf32>
    %2 = vector.shape_cast %1 : vector<16xf32> to vector<16x1xf32>
    %cst_1 = arith.constant 1.280000e+02 : f32
    %3 = vector.broadcast %cst_1 : f32 to vector<16x1xf32>
    %4 = arith.divf %2, %3 : vector<16x1xf32>
    %5 = vector.broadcast %4 : vector<16x1xf32> to vector<16x128xf32>
    %6 = arith.subf %0, %5 : vector<16x128xf32>
    %7 = arith.mulf %6, %6 : vector<16x128xf32>
    %cst_2 = arith.constant dense<0.000000e+00> : vector<16xf32>
    %8 = vector.multi_reduction <add>, %7, %cst_2 [1] : vector<16x128xf32> to vector<16xf32>
    %9 = vector.shape_cast %8 : vector<16xf32> to vector<16x1xf32>
    %cst_3 = arith.constant 1.280000e+02 : f32
    %10 = vector.broadcast %cst_3 : f32 to vector<16x1xf32>
    %11 = arith.divf %9, %10 : vector<16x1xf32>
    %cst_4 = arith.constant 9.99999974E-6 : f32
    %12 = vector.broadcast %cst_4 : f32 to vector<16x1xf32>
    %13 = arith.addf %11, %12 : vector<16x1xf32>
    %14 = math.rsqrt %13 : vector<16x1xf32>
    %15 = vector.broadcast %14 : vector<16x1xf32> to vector<16x128xf32>
    %16 = arith.mulf %6, %15 : vector<16x128xf32>
    %c0_5 = arith.constant 0 : index
    %c0_6 = arith.constant 0 : index
    %17 = vector.load %arg3[%c0_5, %c0_6] : memref<1x128xf32, #tpu.memory_space<vmem>>, vector<1x128xf32>
    %18 = vector.broadcast %17 : vector<1x128xf32> to vector<16x128xf32>
    %19 = arith.mulf %16, %18 : vector<16x128xf32>
    %c0_7 = arith.constant 0 : index
    %c0_8 = arith.constant 0 : index
    %20 = vector.load %arg4[%c0_7, %c0_8] : memref<1x128xf32, #tpu.memory_space<vmem>>, vector<1x128xf32>
    %21 = vector.broadcast %20 : vector<1x128xf32> to vector<16x128xf32>
    %22 = arith.addf %19, %21 : vector<16x128xf32>
    %23 = arith.truncf %22 : vector<16x128xf32> to vector<16x128xbf16>
    %c0_9 = arith.constant 0 : index
    %c0_10 = arith.constant 0 : index
    %24 = vector.load %arg5[%c0_9, %c0_10] : memref<256x128xbf16, #tpu.memory_space<vmem>>, vector<256x128xbf16>
    %cst_11 = arith.constant dense<0.000000e+00> : vector<16x256xf32>
    %25 = tpu.matmul %23, %24, %cst_11 {dimension_numbers = #tpu.dot_dimension_numbers<[1], [1], [0], [0], [0, 0, 1, 0], [], []>} : vector<16x128xbf16>, vector<256x128xbf16>, vector<16x256xf32> -> vector<16x256xf32>
    %c0_12 = arith.constant 0 : index
    %c0_13 = arith.constant 0 : index
    %26 = vector.load %arg6[%c0_12, %c0_13] : memref<16x256xf32, #tpu.memory_space<vmem>>, vector<16x256xf32>
    tpu.vector_store %arg6[%c0_12, %c0_13], %25 {strides = array<i32>} : memref<16x256xf32, #tpu.memory_space<vmem>>, vector<16x256xf32>,
    return
  }
  func.func @transform_0(%arg0: i32, %arg1: i32) -> (i32, i32) {
    %c0_i32 = arith.constant 0 : i32
    %c0_i32_0 = arith.constant 0 : i32
    return %arg0, %c0_i32 : i32, i32
  }
  func.func @transform_1(%arg0: i32, %arg1: i32) -> (i32, i32) {
    %c0_i32 = arith.constant 0 : i32
    %c0_i32_0 = arith.constant 0 : i32
    %c0_i32_1 = arith.constant 0 : i32
    return %c0_i32, %c0_i32_0 : i32, i32
  }
  func.func @transform_2(%arg0: i32, %arg1: i32) -> (i32, i32) {
    %c0_i32 = arith.constant 0 : i32
    %c0_i32_0 = arith.constant 0 : i32
    %c0_i32_1 = arith.constant 0 : i32
    return %c0_i32, %c0_i32_0 : i32, i32
  }
  func.func @transform_3(%arg0: i32, %arg1: i32) -> (i32, i32) {
    %c0_i32 = arith.constant 0 : i32
    %c0_i32_0 = arith.constant 0 : i32
    return %arg1, %c0_i32 : i32, i32
  }
  func.func @transform_4(%arg0: i32, %arg1: i32) -> (i32, i32) {
    %c0_i32 = arith.constant 0 : i32
    return %arg0, %arg1 : i32, i32
  }
}

</mosaic_0001>

<bundles_post_ra>
// kernel: gpt_forward.14
= control target key start
LH: loop header
LB: loop body
LE: loop exit
PB: predicated region body
PF: predicated region fallthrough
CT: control target
= control target key end

     0   :  { %10 = vsyncpa [#allocation3], 0  ;;  %s1118_s0 = inlined_call_operand.vmem [shape: f32[16,128], index: 0, kind: input, shape index: {}]   ;;  %s1119_s1 = inlined_call_operand.vmem [shape: f32[1,128], index: 1, kind: input, shape index: {}]   ;;  %s1120_s2 = inlined_call_operand.vmem [shape: f32[1,128], index: 2, kind: input, shape index: {}]   ;;  %s1121_s3 = inlined_call_operand.hbm [shape: bf16[128,512], index: 3, kind: input, shape index: {}]   ;;  %s1122_s4 = inlined_call_operand.vmem [shape: f32[1,512], index: 4, kind: input, shape index: {}]   ;;  %s1123_s5 = inlined_call_operand.vmem [shape: f32[16,512], index: 5, kind: output, shape index: {}]  }
   0x1   :  { %12 = vsyncpa [#allocation3 + $0x1], 0  ;;  %s954_s18 = smov 0   ;;  %s956_s19 = smov 0  }
   0x2   :  { %s958_s20 = smov 0   ;;  %s960_s21 = smov 0  }
   0x3   :  { %s962_s22 = smov 0   ;;  %s964_s23 = smov 0  }
   0x4 LB: > { %s664_s24 = sadd.s32 4294967295, %s918_s23   ;;  %s27_s25 = sadd.s32 1, %s914_s22  ;;  %s918_s23 = sphi %s964_s23, %s18_s23   ;;  %s914_s22 = sphi %s962_s22, %s1131_s22   ;;  %s910_s21 = sphi %s960_s21, %s1130_s21   ;;  %s906_s20 = sphi %s958_s20, %s1129_s20   ;;  %s902_s19 = sphi %s956_s19, %s1128_s19   ;;  %s898_s18 = sphi %s954_s18, %s1127_s18  }
   0x5   : > { %p28_p0 = scmp.ge.s32.totalorder %s27_s25, 2  ;;  %s105_s26 = sadd.s32 1, %s906_s20 }
   0x6   : > { %p112_p1 = scmp.ne.s32.totalorder %s906_s20, %s902_s19  ;;  %p113_p2 = scmp.eq.s32.totalorder %s918_s23, 0 }
   0x7   : > { %s1133_s25 = smov (%p28_p0, %s27_s25), 0  ;;  %p118_p4 = scmp.ne.s32.totalorder %s902_s19, %s898_s18 }
   0x8   : > { %p990_p3 = por %p113_p2, %p112_p1  ;;  %s102_s28 = ssub.s32 %s914_s22, %s1133_s25 }
   0x9   : > { %p119_p5 = scmp.eq.s32.totalorder %s664_s24, 0  ;;  %p103_p6 = scmp.eq.s32.totalorder %s102_s28, 0 }
   0xa   : > { %p170_p7 = scmp.eq.s32.totalorder %s664_s24, 1  ;;  %p769_p10 = scmp.lt.s32.totalorder %s918_s23, 2 }
   0xb   : > { %p997_p8 = por %p119_p5, %p118_p4  ;;  %s211_s7 = sand.u32 1, %s906_s20  }
   0xc   : > { %s1002_s30 = scalar_select %p103_p6, %s906_s20, %s105_s26  }
   0xd   : > { %p1004_p9 = por %p170_p7, %p112_p1  ;;  %s745_s8 = sshll.u32 %s914_s22, 3 }
   0xe   : > { %s669_s9 = sshll.u32 %s211_s7, 7  ;;  %s220_s12 = scalar_lea.hbm %s1121_s3, %s745_s8 }
   0xf   : > { %s221_s13 = sshll.u32 %s220_s12, 4  ;;  %s215_s14 = scalar_lea.vmem [#allocation2], %s669_s9  ;;  %s222_s13 = int_to_ptr.hbm [resolvable:$true] %s221_s13 }
  0x10   : > { %s223_s15 = sshll.u32 %s215_s14, 4  ;;  %p766_p11 = pnand %p769_p10, %p990_p3  ;;  %s224_s15 = int_to_ptr.vmem [resolvable:$true] %s223_s15 }
  0x11   : > { %p672_p12 = scmp.ge.s32.totalorder %s918_s23, 1  ;;  %s212_s16 = scalar_lea.sflag [#allocation3], %s211_s7 }
  0x12   : > { %s920_s17 = smov 256   ;;  %s921_s18 = smov 128  }
  0x13   : > { %s922_s24 = smov 8   ;;  %p239_p13 = scmp.lt.s32.totalorder %s918_s23, 3 }
  0x14   : > { %768 = dma.hbm_to_vmem [thread:$0]  (!%p766_p11), %s222_s13, 2048, %s224_s15, %s212_s16, %s920_s17, %s921_s18, %s922_s24  }
  0x15   : > { %p240_p0 = pnand %p672_p12, %p239_p13 }
  0x16   : > { %s1019_s26 = sand.u32 (!%p240_p0), 1, %s902_s19  }
  0x17   : > { %243 = sbr.rel (%p240_p0) target bundleno = 473 (0x1d9), region = 40  ;;  %s673_s28 = sshll.u32 (!%p240_p0), %s1019_s26, 7 }
  0x18   : > { %s246_s8 = scalar_lea.sflag (!%p240_p0), [#allocation3], %s1019_s26  ;;  %s1023_s9 = scalar_lea.vmem (!%p240_p0), [#allocation2], %s673_s28 }
  0x1c   : > { %893 = dma.done.wait (%p997_p8), %s246_s8, 2048  }
  0x1d   : > { %895 = vsyncadd (%p997_p8), %s246_s8, 4294965248  ;;  %v299_v0 = vld [vmem:[%s1118_s0] sm:$0xff]  ;;  %v300_v1 = vld [vmem:[%s1118_s0 + $0x8] sm:$0xff]  ;;  %v923_v2 = vmov 128.0   ;;  %s675_s15 = sshll.u32 %s910_s21, 1  ;;  %s674_s24 = sshll.u32 %s1019_s26, 5 }
  0x1e   : > { %301 = vadd.xlane.f32.xlu0 %v299_v0  ;;  %824 = vrcp.f32 %v923_v2  ;;  %v734_v17 = vld [vmem:[%s1023_s9 + $0x70] sm:$0xf]  ;;  %v761_v18 = vld [vmem:[%s1023_s9 + $0x74] sm:$0xf0]  ;;  %v760_v19 = vld [vmem:[%s1023_s9 + $0x74] sm:$0xf] }
  0x1f   : > { %v735_v20 = vor.u32 %v761_v18, %v734_v17  ;;  %v736_v21 = vld [vmem:[%s1023_s9 + $0x78] sm:$0xf0]  ;;  %v726_v23 = vld [vmem:[%s1023_s9 + $0x60] sm:$0xf]  ;;  %v759_v24 = vld [vmem:[%s1023_s9 + $0x64] sm:$0xf0] }
  0x20   : > { %v739_v22 = vor.u32 %v760_v19, %v736_v21  ;;  %v758_v25 = vld [vmem:[%s1023_s9 + $0x64] sm:$0xf]  ;;  %v727_v26 = vor.u32 %v759_v24, %v726_v23  ;;  %v728_v27 = vld [vmem:[%s1023_s9 + $0x68] sm:$0xf0]  ;;  %v718_v29 = vld [vmem:[%s1023_s9 + $0x50] sm:$0xf] }
  0x21   : > { %463 = vmatpush.bf16.msra.mxu0 %v735_v20  ;;  %v731_v28 = vor.u32 %v758_v25, %v728_v27  ;;  %v757_v30 = vld [vmem:[%s1023_s9 + $0x54] sm:$0xf0]  ;;  %v756_v31 = vld [vmem:[%s1023_s9 + $0x54] sm:$0xf]  ;;  %v720_v33 = vld [vmem:[%s1023_s9 + $0x58] sm:$0xf0] }
  0x22   : > { %477 = vmatpush.bf16.msra.mxu1 %v739_v22  ;;  %v719_v32 = vor.u32 %v757_v30, %v718_v29  ;;  %v723_v34 = vor.u32 %v756_v31, %v720_v33  ;;  %v710_v35 = vld [vmem:[%s1023_s9 + $0x40] sm:$0xf]  ;;  %v755_v36 = vld [vmem:[%s1023_s9 + $0x44] sm:$0xf0]  ;;  %v754_v37 = vld [vmem:[%s1023_s9 + $0x44] sm:$0xf] }
  0x23   : > { %v711_v38 = vor.u32 %v755_v36, %v710_v35  ;;  %v712_v39 = vld [vmem:[%s1023_s9 + $0x48] sm:$0xf0]  ;;  %v702_v41 = vld [vmem:[%s1023_s9 + $0x30] sm:$0xf]  ;;  %v753_v42 = vld [vmem:[%s1023_s9 + $0x34] sm:$0xf0] }
  0x24   : > { %v825_v3 = vpop.eup %824  ;;  %v715_v40 = vor.u32 %v754_v37, %v712_v39  ;;  %v752_v43 = vld [vmem:[%s1023_s9 + $0x34] sm:$0xf]  ;;  %v703_v44 = vor.u32 %v753_v42, %v702_v41  ;;  %v704_v45 = vld [vmem:[%s1023_s9 + $0x38] sm:$0xf0]  ;;  %v694_v47 = vld [vmem:[%s1023_s9 + $0x20] sm:$0xf] }
  0x25   : > { %v306_v4 = vmul.f32 128.0, %v825_v3  ;;  %vm310_vm0 = vweird.f32 %v825_v3  ;;  %464 = vmatpush.bf16.msra.mxu0 %v727_v26  ;;  %v707_v46 = vor.u32 %v752_v43, %v704_v45  ;;  %v751_v48 = vld [vmem:[%s1023_s9 + $0x24] sm:$0xf0]  ;;  %v750_v49 = vld [vmem:[%s1023_s9 + $0x24] sm:$0xf]  ;;  %p293_p1 = scmp.lt.s32.totalorder %s675_s15, 3 }
  0x26   : > { %303 = vadd.xlane.f32.xlu0 %v300_v1  ;;  %478 = vmatpush.bf16.msra.mxu1 %v731_v28  ;;  %v695_v50 = vor.u32 %v751_v48, %v694_v47  ;;  %v696_v51 = vld [vmem:[%s1023_s9 + $0x28] sm:$0xf0]  ;;  %v686_v53 = vld [vmem:[%s1023_s9 + $0x10] sm:$0xf]  ;;  %v749_v54 = vld [vmem:[%s1023_s9 + $0x14] sm:$0xf0] }
  0x27   : > { %v307_v5 = vsub.f32 1.0, %v306_v4  ;;  %v699_v52 = vor.u32 %v750_v49, %v696_v51  ;;  %v748_v55 = vld [vmem:[%s1023_s9 + $0x14] sm:$0xf]  ;;  %v687_v56 = vor.u32 %v749_v54, %v686_v53  ;;  %v688_v57 = vld [vmem:[%s1023_s9 + $0x18] sm:$0xf0]  ;;  %s1135_s15 = smov (!%p293_p1, %s675_s15), 3 }
  0x28   : > { %v678_v58 = vld [vmem:[%s1023_s9] sm:$0xf]  ;;  %v747_v59 = vld [vmem:[%s1023_s9 + $0x4] sm:$0xf0]  ;;  %v691_v60 = vor.u32 %v748_v55, %v688_v57  ;;  %v746_v61 = vld [vmem:[%s1023_s9 + $0x4] sm:$0xf]  ;;  %s295_s18 = scalar_lea.vmem %s1122_s4, %s1135_s15 }
  0x29   : > { %v308_v6 = vmul.f32 %v825_v3, %v307_v5  ;;  %465 = vmatpush.bf16.msra.mxu0 %v719_v32  ;;  %v680_v62 = vld [vmem:[%s1023_s9 + $0x8] sm:$0xf0]  ;;  %v822_v22 = vld [vmem:[%s1119_s1] ss:$0 sm:$0xff]  ;;  %s284_s28 = scalar_lea.vmem [#allocation4], %s674_s24  ;;  %s762_s26 = sshll.u32 (%p1004_p9), %s910_s21, 4 }
  0x2a   : > { %479 = vmatpush.bf16.msra.mxu1 %v723_v34  ;;  %v683_v2 = vor.u32 %v746_v61, %v680_v62  ;;  %v823_v27 = vld [vmem:[%s1120_s2] ss:$0 sm:$0xff]  ;;  %s543_s27 = scalar_lea.vmem (%p1004_p9), %s1123_s5, %s762_s26 }
  0x2b   : > { %v309_v7 = vadd.f32 %v825_v3, %v308_v6 }
  0x2d   : > { %v1035_v8 = vsel %vm310_vm0, %v825_v3, %v309_v7  ;;  %466 = vmatpush.bf16.msra.mxu0 %v711_v38 }
  0x2e   : > { %480 = vmatpush.bf16.msra.mxu1 %v715_v40 }
  0x31   : > { %467 = vmatpush.bf16.msra.mxu0 %v703_v44 }
  0x32   : > { %481 = vmatpush.bf16.msra.mxu1 %v707_v46 }
  0x35   : > { %468 = vmatpush.bf16.msra.mxu0 %v695_v50 }
  0x36   : > { %482 = vmatpush.bf16.msra.mxu1 %v699_v52 }
  0x39   : > { %469 = vmatpush.bf16.msra.mxu0 %v687_v56 }
  0x3a   : > { %483 = vmatpush.bf16.msra.mxu1 %v691_v60 }
  0x3e   : > { %484 = vmatpush.bf16.msra.mxu1 %v683_v2 }
  0x91   : > { %v302_v9 = vpop.xlane.xlu0 %301 }
  0x92   : > { %v312_v10 = vmul.f32 %v1035_v8, %v302_v9 }
  0x94   : > { %v1038_v11 = vsub.f32 %v299_v0, %v312_v10  ;;  %v679_v0 = vor.u32 %v747_v59, %v678_v58 }
  0x96   : > { %v316_v12 = vmul.f32 %v1038_v11, %v1038_v11  ;;  %470 = vmatpush.bf16.msra.mxu0 %v679_v0 }
  0x98   : > { %318 = vadd.xlane.f32.xlu1 %v316_v12 }
  0x99   : > { %v304_v13 = vpop.xlane.xlu0 %303 }
  0x9a   : > { %v313_v14 = vmul.f32 %v1035_v8, %v304_v13 }
  0x9c   : > { %v1043_v15 = vsub.f32 %v300_v1, %v313_v14 }
  0x9e   : > { %v317_v16 = vmul.f32 %v1043_v15, %v1043_v15 }
  0xa0   : > { %320 = vadd.xlane.f32.xlu1 %v317_v16 }
 0x10b   : > { %v319_v63 = vpop.xlane.xlu1 %318 }
 0x10c   : > { %v322_v1 = vmul.f32 %v319_v63, %v1035_v8 }
 0x10e   : > { %v324_v3 = vadd.f32 1e-05, %v322_v1 }
 0x110   : > { %826 = vrsqrt.f32 %v324_v3  ;;  %vm332_vm2 = vweird.f32 %v324_v3 }
 0x113   : > { %v321_v4 = vpop.xlane.xlu1 %320 }
 0x114   : > { %v323_v5 = vmul.f32 %v321_v4, %v1035_v8 }
 0x116   : > { %v827_v6 = vpop.eup %826  ;;  %v325_v7 = vadd.f32 1e-05, %v323_v5 }
 0x117   : > { %v327_v9 = vmul.f32 %v827_v6, %v324_v3  ;;  %vm333_vm1 = vweird.f32 %v827_v6 }
 0x118   : > { %828 = vrsqrt.f32 %v325_v7  ;;  %vm334_vm3 = vmor %vm332_vm2, %vm333_vm1  ;;  %vm342_vm5 = vweird.f32 %v325_v7 }
 0x119   : > { %v328_v10 = vmul.f32 %v827_v6, %v327_v9 }
 0x11b   : > { %v329_v12 = vmul.f32 0.5, %v328_v10 }
 0x11d   : > { %v330_v13 = vsub.f32 1.5, %v329_v12 }
 0x11e   : > { %v829_v14 = vpop.eup %828 }
 0x11f   : > { %v331_v16 = vmul.f32 %v827_v6, %v330_v13  ;;  %v337_v17 = vmul.f32 %v829_v14, %v325_v7  ;;  %vm343_vm4 = vweird.f32 %v829_v14 }
 0x120   : > { %vm344_vm6 = vmor %vm342_vm5, %vm343_vm4 }
 0x121   : > { %v338_v18 = vmul.f32 %v829_v14, %v337_v17  ;;  %v335_v20 = vsel %vm334_vm3, %v827_v6, %v331_v16 }
 0x122   : > { %v346_v8 = vmul.f32 %v335_v20, %v1038_v11  ;;  %v377_v11 = vld [vmem:[%s295_s18] sm:$0x3] }
 0x123   : > { %v339_v19 = vmul.f32 0.5, %v338_v18  ;;  %v380_v32 = vperm.slane %v377_v11, 1 }
 0x124   : > { %v352_v26 = vmul.f32 %v822_v22, %v346_v8 }
 0x125   : > { %v340_v21 = vsub.f32 1.5, %v339_v19 }
 0x126   : > { %v358_v29 = vadd.f32 %v823_v27, %v352_v26 }
 0x127   : > { %v341_v23 = vmul.f32 %v829_v14, %v340_v21 }
 0x129   : > { %v345_v24 = vsel %vm344_vm6, %v829_v14, %v341_v23 }
 0x12a   : > { %v347_v25 = vmul.f32 %v345_v24, %v1043_v15  ;;  %v379_v15 = vperm.slane %v377_v11, 0 }
 0x12c   : > { %v353_v28 = vmul.f32 %v822_v22, %v347_v25 }
 0x12e   : > { %v359_v30 = vadd.f32 %v823_v27, %v353_v28 }
 0x130   : > { %v360_v31 = vpack.c.bf16 %v359_v30, %v358_v29 }
 0x132   : > { %471 = vmatmul.bf16.vlgmr.msra.gmra.mxu0 %v360_v31  ;;  %485 = vmatmul.bf16.vlgmr.msra.gmra.mxu1 %v360_v31 }
 0x1af   : > { %v472_v33 = vpop.f32.mrf.mxu0  ;;  %v486_v34 = vpop.f32.mrf.mxu1 }
 0x1b0   : > { %v473_v35 = vadd.f32 %v472_v33, %v379_v15  ;;  %v487_v36 = vadd.f32 %v486_v34, %v380_v32 }
 0x1b2   : > { %v495_v37 = vmul.f32 0.044715, %v473_v35  ;;  %v496_v38 = vmul.f32 0.044715, %v487_v36  ;;  %v491_v61 = vmul.f32 0.5, %v473_v35  ;;  %v492_v1 = vmul.f32 0.5, %v487_v36 }
 0x1b4   : > { %v499_v39 = vmul.f32 %v495_v37, %v473_v35  ;;  %v500_v40 = vmul.f32 %v496_v38, %v487_v36 }
 0x1b6   : > { %v503_v41 = vmul.f32 %v499_v39, %v473_v35  ;;  %v504_v42 = vmul.f32 %v500_v40, %v487_v36 }
 0x1b7   : > { %v474_v43 = vpop.f32.mrf.mxu0  ;;  %v488_v44 = vpop.f32.mrf.mxu1 }
 0x1b8   : > { %v507_v45 = vadd.f32 %v503_v41, %v473_v35  ;;  %v508_v46 = vadd.f32 %v504_v42, %v487_v36  ;;  %v475_v47 = vadd.f32 %v474_v43, %v379_v15  ;;  %v489_v48 = vadd.f32 %v488_v44, %v380_v32 }
 0x1ba   : > { %v511_v49 = vmul.f32 0.7978846, %v507_v45  ;;  %v512_v50 = vmul.f32 0.7978846, %v508_v46  ;;  %v497_v51 = vmul.f32 0.044715, %v475_v47 }
 0x1bb   : > { %v498_v52 = vmul.f32 0.044715, %v489_v48  ;;  %v493_v7 = vmul.f32 0.5, %v475_v47  ;;  %v494_v10 = vmul.f32 0.5, %v489_v48 }
 0x1bc   : > { %830 = vtanh.f32 %v511_v49  ;;  %v501_v53 = vmul.f32 %v497_v51, %v475_v47 }
 0x1bd   : > { %832 = vtanh.f32 %v512_v50  ;;  %v502_v54 = vmul.f32 %v498_v52, %v489_v48 }
 0x1be   : > { %v505_v55 = vmul.f32 %v501_v53, %v475_v47 }
 0x1bf   : > { %v506_v56 = vmul.f32 %v502_v54, %v489_v48 }
 0x1c0   : > { %v509_v57 = vadd.f32 %v505_v55, %v475_v47 }
 0x1c1   : > { %v510_v58 = vadd.f32 %v506_v56, %v489_v48 }
 0x1c2   : > { %v831_v59 = vpop.eup %830  ;;  %v513_v63 = vmul.f32 0.7978846, %v509_v57 }
 0x1c3   : > { %v833_v60 = vpop.eup %832  ;;  %v519_v62 = vadd.f32 1.0, %v831_v59  ;;  %v514_v0 = vmul.f32 0.7978846, %v510_v58 }
 0x1c4   : > { %v520_v2 = vadd.f32 1.0, %v833_v60  ;;  %834 = vtanh.f32 %v513_v63 }
 0x1c5   : > { %v523_v3 = vmul.f32 %v519_v62, %v491_v61  ;;  %836 = vtanh.f32 %v514_v0 }
 0x1c6   : > { %v524_v4 = vmul.f32 %v520_v2, %v492_v1 }
 0x1c7   : > { %527 = vst [vmem:[%s284_s28] sm:$0xff] %v523_v3 }
 0x1c8   : > { %528 = vst [vmem:[%s284_s28 + $0x8] sm:$0xff] %v524_v4 }
 0x1ca   : > { %v835_v5 = vpop.eup %834 }
 0x1cb   : > { %v837_v6 = vpop.eup %836  ;;  %v521_v9 = vadd.f32 1.0, %v835_v5 }
 0x1cc   : > { %v522_v12 = vadd.f32 1.0, %v837_v6  ;;  %537 = sbr.rel (!%p1004_p9) target bundleno = 473 (0x1d9), region = 48 }
 0x1cd   : > { %v525_v13 = vmul.f32 %v521_v9, %v493_v7 }
 0x1ce   : > { %v526_v14 = vmul.f32 %v522_v12, %v494_v10  ;;  %v556_v16 = vld [vmem:[%s284_s28] sm:$0xff] (%p1004_p9) }
 0x1cf   : > { %529 = vst [vmem:[%s284_s28 + $0x10] sm:$0xff] %v525_v13  ;;  %v558_v17 = vld [vmem:[%s284_s28 + $0x8] sm:$0xff] (%p1004_p9) }
 0x1d0   : > { %530 = vst [vmem:[%s284_s28 + $0x18] sm:$0xff] %v526_v14 }
 0x1d1   : > { %557 = vst [vmem:[%s543_s27] sm:$0xff] %v556_v16 }
 0x1d2   : > { %559 = vst [vmem:[%s543_s27 + $0x8] sm:$0xff] %v558_v17 }
 0x1d6   : > { %v560_v18 = vld [vmem:[%s284_s28 + $0x10] sm:$0xff] }
 0x1d7   : > { %v562_v19 = vld [vmem:[%s284_s28 + $0x18] sm:$0xff]  ;;  %561 = vst [vmem:[%s543_s27 + $0x20] sm:$0xff] %v560_v18 }
 0x1d8   : > { %563 = vst [vmem:[%s543_s27 + $0x28] sm:$0xff] %v562_v19 }
 0x1d9 PF: > { %s18_s23 = sadd.s32 1, %s918_s23   ;;  %s1127_s18 = smov %s902_s19 }
 0x1da   : > { %p15_p2 = scmp.ge.s32.totalorder %s18_s23, 4   ;;  %s1128_s19 = smov %s906_s20 }
 0x1db   : > { %s1129_s20 = smov %s1002_s30  ;;  %s1130_s21 = smov %s914_s22 }
 0x1dc   : > { %s1131_s22 = smov %s1133_s25  ;;  %17 = sbr.rel (!%p15_p2) target bundleno = 4 (0x4), region = 109 }
 0x1e1   :  { %579 = vsyncpa [#allocation3], 1 }
 0x1e2   :  { %581 = vsyncpa [#allocation3 + $0x1], 1 }

// kernel: gpt_forward.13
= control target key start
LH: loop header
LB: loop body
LE: loop exit
PB: predicated region body
PF: predicated region fallthrough
CT: control target
= control target key end

     0   :  { %9 = vsyncpa [#allocation3], 0  ;;  %s199_s18 = smov [#allocation2]   ;;  %s200_s20 = smov 64   ;;  %s251_s0 = inlined_call_operand.vmem [shape: f32[16,128], index: 0, kind: input, shape index: {}]   ;;  %s252_s1 = inlined_call_operand.hbm [shape: bf16[128,128], index: 1, kind: input, shape index: {}]   ;;  %s253_s2 = inlined_call_operand.vmem [shape: f32[1,128], index: 2, kind: input, shape index: {}]   ;;  %s254_s3 = inlined_call_operand.vmem [shape: f32[16,128], index: 3, kind: input, shape index: {}]   ;;  %s255_s4 = inlined_call_operand.vmem [shape: f32[16,128], index: 4, kind: output, shape index: {}]  }
   0x1   :  { %s16_s17 = sshll.u32 %s252_s1, 4  ;;  %s18_s19 = sshll.u32 %s199_s18, 4  ;;  %s17_s17 = int_to_ptr.hbm [resolvable:$true] %s16_s17  ;;  %s19_s19 = int_to_ptr.vmem [resolvable:$true] %s18_s19 }
   0x2   :  { %s201_s21 = smov 4  }
   0x3   :  { %24 = dma.hbm_to_vmem [thread:$0]  %s17_s17, 1024, %s19_s19, [#allocation3], %s200_s20, %s200_s20, %s201_s21  }
   0x4   :  { %197 = dma.done.wait [#allocation3], 1024  }
   0x5   :  { %198 = vsyncadd [#allocation3], 4294966272  ;;  %v168_v0 = vld [vmem:[#allocation2 + $0x38] sm:$0xff]  ;;  %v167_v1 = vld [vmem:[#allocation2 + $0x30] sm:$0xff] }
   0x6   :  { %104 = vmatpush.bf16.msra.mxu0 %v168_v0  ;;  %v166_v2 = vld [vmem:[#allocation2 + $0x28] sm:$0xff]  ;;  %v165_v3 = vld [vmem:[#allocation2 + $0x20] sm:$0xff]  ;;  %v164_v4 = vld [vmem:[#allocation2 + $0x18] sm:$0xff] }
   0x7   :  { %v163_v5 = vld [vmem:[#allocation2 + $0x10] sm:$0xff]  ;;  %v162_v6 = vld [vmem:[#allocation2 + $0x8] sm:$0xff]  ;;  %v161_v7 = vld [vmem:[#allocation2] sm:$0xff] }
   0x8   :  { %v33_v8 = vld [vmem:[%s251_s0] sm:$0xff]  ;;  %v34_v9 = vld [vmem:[%s251_s0 + $0x8] sm:$0xff] }
   0x9   :  { %v35_v10 = vpack.c.bf16 %v34_v9, %v33_v8  ;;  %v172_v11 = vld [vmem:[%s253_s2] ss:$0 sm:$0xff]  ;;  %v119_v17 = vld [vmem:[%s254_s3 + $0x8] sm:$0xff] }
   0xa   :  { %105 = vmatpush.bf16.msra.mxu0 %v167_v1  ;;  %v118_v13 = vld [vmem:[%s254_s3] sm:$0xff] }
   0xe   :  { %106 = vmatpush.bf16.msra.mxu0 %v166_v2 }
  0x12   :  { %107 = vmatpush.bf16.msra.mxu0 %v165_v3 }
  0x16   :  { %108 = vmatpush.bf16.msra.mxu0 %v164_v4 }
  0x1a   :  { %109 = vmatpush.bf16.msra.mxu0 %v163_v5 }
  0x1e   :  { %110 = vmatpush.bf16.msra.mxu0 %v162_v6 }
  0x22   :  { %111 = vmatpush.bf16.msra.mxu0 %v161_v7 }
  0x25   :  { %112 = vmatmul.bf16.vlgmr.msra.gmra.mxu0 %v35_v10 }
  0xa2   :  { %v113_v12 = vpop.f32.mrf.mxu0 }
  0xa3   :  { %v114_v14 = vadd.f32 %v172_v11, %v113_v12 }
  0xa5   :  { %v120_v15 = vadd.f32 %v118_v13, %v114_v14 }
  0xa7   :  { %122 = vst [vmem:[%s255_s4] sm:$0xff] %v120_v15 }
  0xaa   :  { %v115_v16 = vpop.f32.mrf.mxu0 }
  0xab   :  { %v116_v18 = vadd.f32 %v172_v11, %v115_v16 }
  0xad   :  { %v121_v19 = vadd.f32 %v119_v17, %v116_v18 }
  0xaf   :  { %123 = vst [vmem:[%s255_s4 + $0x8] sm:$0xff] %v121_v19 }
  0xb0   :  { %128 = vsyncpa [#allocation3], 1 }

// kernel: gpt_forward.11
= control target key start
LH: loop header
LB: loop body
LE: loop exit
PB: predicated region body
PF: predicated region fallthrough
CT: control target
= control target key end

     0   :  { %10 = vsyncpa [#allocation3], 0  ;;  %s953_s0 = inlined_call_operand.vmem [shape: f32[16,128], index: 0, kind: input, shape index: {}]   ;;  %s954_s1 = inlined_call_operand.vmem [shape: f32[1,128], index: 1, kind: input, shape index: {}]   ;;  %s955_s2 = inlined_call_operand.vmem [shape: f32[1,128], index: 2, kind: input, shape index: {}]   ;;  %s956_s3 = inlined_call_operand.hbm [shape: bf16[128,384], index: 3, kind: input, shape index: {}]   ;;  %s957_s4 = inlined_call_operand.vmem [shape: f32[1,384], index: 4, kind: input, shape index: {}]   ;;  %s958_s5 = inlined_call_operand.vmem [shape: f32[16,384], index: 5, kind: output, shape index: {}]  }
   0x1   :  { %12 = vsyncpa [#allocation3 + $0x1], 0  ;;  %s820_s18 = smov 0   ;;  %s822_s19 = smov 0  }
   0x2   :  { %s824_s20 = smov 0   ;;  %s826_s21 = smov 0  }
   0x3   :  { %s828_s22 = smov 0   ;;  %s830_s23 = smov 0  }
   0x4 LB: > { %s582_s24 = sadd.s32 4294967295, %s784_s23   ;;  %s27_s25 = sadd.s32 1, %s780_s22  ;;  %s784_s23 = sphi %s830_s23, %s18_s23   ;;  %s780_s22 = sphi %s828_s22, %s966_s22   ;;  %s776_s21 = sphi %s826_s21, %s965_s21   ;;  %s772_s20 = sphi %s824_s20, %s964_s20   ;;  %s768_s19 = sphi %s822_s19, %s963_s19   ;;  %s764_s18 = sphi %s820_s18, %s962_s18  }
   0x5   : > { %p28_p0 = scmp.ge.s32.totalorder %s27_s25, 3  ;;  %s105_s26 = sadd.s32 1, %s772_s20 }
   0x6   : > { %p112_p1 = scmp.ne.s32.totalorder %s772_s20, %s768_s19  ;;  %p113_p2 = scmp.eq.s32.totalorder %s784_s23, 0 }
   0x7   : > { %s968_s25 = smov (%p28_p0, %s27_s25), 0  ;;  %p118_p4 = scmp.ne.s32.totalorder %s768_s19, %s764_s18 }
   0x8   : > { %p856_p3 = por %p113_p2, %p112_p1  ;;  %s102_s28 = ssub.s32 %s780_s22, %s968_s25 }
   0x9   : > { %p119_p5 = scmp.eq.s32.totalorder %s582_s24, 0  ;;  %p103_p6 = scmp.eq.s32.totalorder %s102_s28, 0 }
   0xa   : > { %p170_p7 = scmp.eq.s32.totalorder %s582_s24, 2  ;;  %p642_p10 = scmp.lt.s32.totalorder %s784_s23, 3 }
   0xb   : > { %p863_p8 = por %p119_p5, %p118_p4  ;;  %s211_s7 = sand.u32 1, %s772_s20  }
   0xc   : > { %s868_s30 = scalar_select %p103_p6, %s772_s20, %s105_s26  }
   0xd   : > { %p870_p9 = por %p170_p7, %p112_p1  ;;  %s588_s8 = sshll.u32 %s780_s22, 2 }
   0xe   : > { %s587_s9 = sshll.u32 %s211_s7, 6  ;;  %s219_s12 = scalar_lea.hbm %s956_s3, %s588_s8 }
   0xf   : > { %s220_s13 = sshll.u32 %s219_s12, 4  ;;  %s215_s14 = scalar_lea.vmem [#allocation2], %s587_s9  ;;  %s221_s13 = int_to_ptr.hbm [resolvable:$true] %s220_s13 }
  0x10   : > { %s222_s15 = sshll.u32 %s215_s14, 4  ;;  %p639_p11 = pnand %p642_p10, %p856_p3  ;;  %s223_s15 = int_to_ptr.vmem [resolvable:$true] %s222_s15 }
  0x11   : > { %p589_p12 = scmp.ge.s32.totalorder %s784_s23, 1  ;;  %s212_s16 = scalar_lea.sflag [#allocation3], %s211_s7 }
  0x12   : > { %s786_s17 = smov 192   ;;  %s787_s18 = smov 64  }
  0x13   : > { %s788_s24 = smov 4   ;;  %p236_p13 = scmp.lt.s32.totalorder %s784_s23, 4 }
  0x14   : > { %641 = dma.hbm_to_vmem [thread:$0]  (!%p639_p11), %s221_s13, 1024, %s223_s15, %s212_s16, %s786_s17, %s787_s18, %s788_s24  }
  0x15   : > { %p237_p0 = pnand %p589_p12, %p236_p13 }
  0x16   : > { %s885_s26 = sand.u32 (!%p237_p0), 1, %s768_s19  }
  0x17   : > { %240 = sbr.rel (%p237_p0) target bundleno = 451 (0x1c3), region = 40  ;;  %s590_s28 = sshll.u32 (!%p237_p0), %s885_s26, 6 }
  0x18   : > { %s243_s8 = scalar_lea.sflag (!%p237_p0), [#allocation3], %s885_s26  ;;  %s889_s9 = scalar_lea.vmem (!%p237_p0), [#allocation2], %s590_s28 }
  0x1c   : > { %759 = dma.done.wait (%p863_p8), %s243_s8, 1024  }
  0x1d   : > { %761 = vsyncadd (%p863_p8), %s243_s8, 4294966272  ;;  %v291_v0 = vld [vmem:[%s953_s0] sm:$0xff]  ;;  %v292_v1 = vld [vmem:[%s953_s0 + $0x8] sm:$0xff]  ;;  %v789_v2 = vmov 128.0   ;;  %p287_p1 = scmp.lt.s32.totalorder %s776_s21, 2  ;;  %s591_s24 = sshll.u32 %s885_s26, 4 }
  0x1e   : > { %293 = vadd.xlane.f32.xlu0 %v291_v0  ;;  %698 = vrcp.f32 %v789_v2  ;;  %v635_v17 = vld [vmem:[%s889_s9 + $0x38] sm:$0xff]  ;;  %v634_v18 = vld [vmem:[%s889_s9 + $0x30] sm:$0xff]  ;;  %v633_v19 = vld [vmem:[%s889_s9 + $0x28] sm:$0xff]  ;;  %s625_s27 = sshll.u32 (%p870_p9), %s776_s21, 3 }
  0x1f   : > { %s903_s29 = scalar_select %p287_p1, %s776_s21, 2  ;;  %421 = vmatpush.bf16.msra.mxu0 %v635_v17  ;;  %v632_v20 = vld [vmem:[%s889_s9 + $0x20] sm:$0xff]  ;;  %v631_v21 = vld [vmem:[%s889_s9 + $0x18] sm:$0xff]  ;;  %v630_v22 = vld [vmem:[%s889_s9 + $0x10] sm:$0xff] }
  0x20   : > { %v629_v23 = vld [vmem:[%s889_s9 + $0x8] sm:$0xff]  ;;  %v628_v25 = vld [vmem:[%s889_s9] sm:$0xff]  ;;  %s280_s9 = scalar_lea.vmem [#allocation4], %s591_s24  ;;  %s448_s10 = scalar_lea.vmem (%p870_p9), %s958_s5, %s625_s27 }
  0x21   : > { %s289_s14 = scalar_lea.vmem %s957_s4, %s903_s29  ;;  %v695_v44 = vld [vmem:[%s954_s1] ss:$0 sm:$0xff] }
  0x22   : > { %v696_v49 = vld [vmem:[%s955_s2] ss:$0 sm:$0xff] }
  0x23   : > { %422 = vmatpush.bf16.msra.mxu0 %v634_v18  ;;  %v697_v54 = vld [vmem:[%s289_s14] ss:$0 sm:$0xff] }
  0x24   : > { %v699_v3 = vpop.eup %698 }
  0x25   : > { %v298_v4 = vmul.f32 128.0, %v699_v3  ;;  %vm302_vm0 = vweird.f32 %v699_v3 }
  0x26   : > { %295 = vadd.xlane.f32.xlu0 %v292_v1 }
  0x27   : > { %v299_v5 = vsub.f32 1.0, %v298_v4  ;;  %423 = vmatpush.bf16.msra.mxu0 %v633_v19 }
  0x29   : > { %v300_v6 = vmul.f32 %v699_v3, %v299_v5 }
  0x2b   : > { %v301_v7 = vadd.f32 %v699_v3, %v300_v6  ;;  %424 = vmatpush.bf16.msra.mxu0 %v632_v20 }
  0x2d   : > { %v303_v8 = vsel %vm302_vm0, %v699_v3, %v301_v7 }
  0x2f   : > { %425 = vmatpush.bf16.msra.mxu0 %v631_v21 }
  0x33   : > { %426 = vmatpush.bf16.msra.mxu0 %v630_v22 }
  0x37   : > { %427 = vmatpush.bf16.msra.mxu0 %v629_v23 }
  0x3b   : > { %428 = vmatpush.bf16.msra.mxu0 %v628_v25 }
  0x91   : > { %v294_v9 = vpop.xlane.xlu0 %293 }
  0x92   : > { %v304_v10 = vmul.f32 %v303_v8, %v294_v9 }
  0x94   : > { %v306_v11 = vsub.f32 %v291_v0, %v304_v10 }
  0x96   : > { %v308_v12 = vmul.f32 %v306_v11, %v306_v11 }
  0x98   : > { %310 = vadd.xlane.f32.xlu1 %v308_v12 }
  0x99   : > { %v296_v13 = vpop.xlane.xlu0 %295 }
  0x9a   : > { %v305_v14 = vmul.f32 %v303_v8, %v296_v13 }
  0x9c   : > { %v307_v15 = vsub.f32 %v292_v1, %v305_v14 }
  0x9e   : > { %v309_v16 = vmul.f32 %v307_v15, %v307_v15 }
  0xa0   : > { %312 = vadd.xlane.f32.xlu1 %v309_v16 }
 0x10b   : > { %v311_v24 = vpop.xlane.xlu1 %310 }
 0x10c   : > { %v314_v26 = vmul.f32 %v311_v24, %v303_v8 }
 0x10e   : > { %v316_v27 = vadd.f32 1e-05, %v314_v26 }
 0x110   : > { %700 = vrsqrt.f32 %v316_v27  ;;  %vm324_vm2 = vweird.f32 %v316_v27 }
 0x113   : > { %v313_v28 = vpop.xlane.xlu1 %312 }
 0x114   : > { %v315_v29 = vmul.f32 %v313_v28, %v303_v8 }
 0x116   : > { %v701_v30 = vpop.eup %700  ;;  %v317_v31 = vadd.f32 1e-05, %v315_v29 }
 0x117   : > { %v319_v32 = vmul.f32 %v701_v30, %v316_v27  ;;  %vm325_vm1 = vweird.f32 %v701_v30 }
 0x118   : > { %702 = vrsqrt.f32 %v317_v31  ;;  %vm326_vm3 = vmor %vm324_vm2, %vm325_vm1  ;;  %vm334_vm5 = vweird.f32 %v317_v31 }
 0x119   : > { %v320_v33 = vmul.f32 %v701_v30, %v319_v32 }
 0x11b   : > { %v321_v34 = vmul.f32 0.5, %v320_v33 }
 0x11d   : > { %v322_v35 = vsub.f32 1.5, %v321_v34 }
 0x11e   : > { %v703_v36 = vpop.eup %702 }
 0x11f   : > { %v323_v37 = vmul.f32 %v701_v30, %v322_v35  ;;  %v329_v38 = vmul.f32 %v703_v36, %v317_v31  ;;  %vm335_vm4 = vweird.f32 %v703_v36 }
 0x120   : > { %vm336_vm6 = vmor %vm334_vm5, %vm335_vm4 }
 0x121   : > { %v330_v39 = vmul.f32 %v703_v36, %v329_v38  ;;  %v327_v41 = vsel %vm326_vm3, %v701_v30, %v323_v37 }
 0x122   : > { %v338_v43 = vmul.f32 %v327_v41, %v306_v11 }
 0x123   : > { %v331_v40 = vmul.f32 0.5, %v330_v39 }
 0x124   : > { %v344_v48 = vmul.f32 %v695_v44, %v338_v43 }
 0x125   : > { %v332_v42 = vsub.f32 1.5, %v331_v40 }
 0x126   : > { %v350_v51 = vadd.f32 %v696_v49, %v344_v48 }
 0x127   : > { %v333_v45 = vmul.f32 %v703_v36, %v332_v42 }
 0x129   : > { %v337_v46 = vsel %vm336_vm6, %v703_v36, %v333_v45 }
 0x12a   : > { %v339_v47 = vmul.f32 %v337_v46, %v307_v15 }
 0x12c   : > { %v345_v50 = vmul.f32 %v695_v44, %v339_v47 }
 0x12e   : > { %v351_v52 = vadd.f32 %v696_v49, %v345_v50 }
 0x130   : > { %v352_v53 = vpack.c.bf16 %v351_v52, %v350_v51 }
 0x132   : > { %429 = vmatmul.bf16.vlgmr.msra.gmra.mxu0 %v352_v53 }
 0x1af   : > { %v430_v55 = vpop.f32.mrf.mxu0 }
 0x1b0   : > { %v431_v56 = vadd.f32 %v697_v54, %v430_v55 }
 0x1b2   : > { %435 = vst [vmem:[%s280_s9] sm:$0xff] %v431_v56 }
 0x1b6   : > { %443 = sbr.rel (!%p870_p9) target bundleno = 451 (0x1c3), region = 48 }
 0x1b7   : > { %v432_v57 = vpop.f32.mrf.mxu0 }
 0x1b8   : > { %v433_v58 = vadd.f32 %v697_v54, %v432_v57 }
 0x1b9   : > { %v479_v59 = vld [vmem:[%s280_s9] sm:$0xff] (%p870_p9) }
 0x1ba   : > { %436 = vst [vmem:[%s280_s9 + $0x8] sm:$0xff] %v433_v58 }
 0x1bb   : > { %480 = vst [vmem:[%s448_s10] sm:$0xff] %v479_v59 }
 0x1c1   : > { %v481_v60 = vld [vmem:[%s280_s9 + $0x8] sm:$0xff] }
 0x1c2   : > { %482 = vst [vmem:[%s448_s10 + $0x18] sm:$0xff] %v481_v60 }
 0x1c3 PF: > { %s18_s23 = sadd.s32 1, %s784_s23   ;;  %s962_s18 = smov %s768_s19 }
 0x1c4   : > { %p15_p2 = scmp.ge.s32.totalorder %s18_s23, 5   ;;  %s963_s19 = smov %s772_s20 }
 0x1c5   : > { %s964_s20 = smov %s868_s30  ;;  %s965_s21 = smov %s780_s22 }
 0x1c6   : > { %s966_s22 = smov %s968_s25  ;;  %17 = sbr.rel (!%p15_p2) target bundleno = 4 (0x4), region = 124 }
 0x1cb   :  { %498 = vsyncpa [#allocation3], 1 }
 0x1cc   :  { %500 = vsyncpa [#allocation3 + $0x1], 1 }

// kernel: gpt_forward.12
= control target key start
LH: loop header
LB: loop body
LE: loop exit
PB: predicated region body
PF: predicated region fallthrough
CT: control target
= control target key end

     0   :  { %s521_s6 = smov 0   ;;  %s608_s0 = inlined_call_operand.vmem [shape: f32[2,8,384], index: 0, kind: input, shape index: {}]   ;;  %s609_s1 = inlined_call_operand.vmem [shape: f32[2,8,128], index: 1, kind: output, shape index: {}]  }
   0x1 LB: > { %s455_s7 = sadd.s32 4294967295, %s506_s6   ;;  %p459_p0 = scmp.ge.s32.totalorder %s506_s6, 1  ;;  %s506_s6 = sphi %s521_s6, %s11_s6  }
   0x2   : > { %p87_p1 = scmp.lt.s32.totalorder %s506_s6, 3 }
   0x4   : > { %p88_p2 = pnand %p459_p0, %p87_p1 }
   0x5   : > { %p106_p3 = scmp.lt.s32.totalorder (!%p88_p2), %s455_s7, 1  ;;  %s508_s12 = smov (!%p88_p2), 64  }
   0x6   : > { %91 = sbr.rel (%p88_p2) target bundleno = 1083 (0x43b), region = 24  ;;  %s509_s13 = smov (!%p88_p2), 32  }
   0x7   : > { %s510_s14 = smov (!%p88_p2), 96  }
   0xb   : > { %s611_s7 = smov (!%p106_p3, %s455_s7), 1  ;;  %vm127_vm0 = vcmask 261120   ;;  %v116_v5 = vlaneseq  ;;  %vm149_vm2 = vcmask 64512   ;;  %vm165_vm3 = vcmask 1043456  }
   0xc   : > { %s472_s8 = smul.u32 24, %s611_s7  ;;  %s461_s15 = sshll.u32 %s611_s7, 3  ;;  %vm254_vm4 = vcmask 523520   ;;  %vm327_vm5 = vcmask 785920   ;;  %vm400_vm6 = vcmask 1048320  }
   0xd   : > { %v545_v6 = vshrl.u32 %v116_v5, 7  ;;  %v547_v7 = vand.u32 127, %v116_v5  ;;  %s575_s18 = scalar_lea.vmem %s609_s1, %s461_s15 }
   0xe   : > { %s535_s11 = scalar_lea.vmem %s608_s0, %s472_s8 }
   0xf   : > { %v123_v0 = vld [vmem:[%s535_s11 + $0x8] sm:$0xff]  ;;  %v121_v3 = vld [vmem:[%s535_s11] sm:$0xff]  ;;  %vm120_vm1 = vcmp.ge.s32.totalorder %v545_v6, %v547_v7  ;;  %v125_v23 = vld [vmem:[%s535_s11 + $0x10] sm:$0xff] }
  0x10   : > { %v124_v1 = vpack.c.bf16 %v123_v0, %v123_v0  ;;  %v122_v4 = vpack.c.bf16 %v121_v3, %v121_v3  ;;  %v126_v24 = vpack.c.bf16 %v125_v23, %v125_v23 }
  0x12   : > { %v132_v2 = vsel %vm127_vm0, %v124_v1, 0  ;;  %266 = vrot.lane.b32.xlu2 %v124_v1, %s508_s12  ;;  %v167_v25 = vsel %vm165_vm3, %v126_v24, 0 }
  0x13   : > { %141 = vmatpush.bf16.xpose.msra.mxu0 %v132_v2  ;;  %176 = vmatpush.bf16.msra.mxu1 %v167_v25 }
  0x1a   : > { %462 = vmatmul.msk.bf16.vlgmr.msra.gmra.mxu0 %vm127_vm0, %v122_v4  ;;  %339 = vrot.lane.b32.xlu2 %v124_v1, %s509_s13 }
  0x22   : > { %263 = vrot.lane.b32.xlu2 %v122_v4, %s508_s12 }
  0x2a   : > { %336 = vrot.lane.b32.xlu2 %v122_v4, %s509_s13 }
  0x6c   : > { %v267_v13 = vpop.permute.xlu2 %266 }
  0x6d   : > { %v272_v26 = vsel %vm127_vm0, %v267_v13, 0 }
  0x6e   : > { %281 = vmatpush.bf16.xpose.msrb.mxu1 %v272_v26 }
  0x74   : > { %v340_v14 = vpop.permute.xlu2 %339 }
  0x75   : > { %v345_v19 = vsel %vm127_vm0, %v340_v14, 0 }
  0x76   : > { %354 = vmatpush.bf16.xpose.msrb.mxu0 %v345_v19 }
  0x7c   : > { %v264_v18 = vpop.permute.xlu2 %263 }
  0x84   : > { %v337_v22 = vpop.permute.xlu2 %336 }
  0x85   : > { %468 = vmatmul.msk.bf16.vlgmr.msrb.gmra.mxu0 %vm127_vm0, %v337_v22 }
  0x97   : > { %v143_v8 = vpop.f32.mrf.mxu0 }
  0x98   : > { %v147_v9 = vmul.f32 0.17677669, %v143_v8 }
  0x9a   : > { %v148_v10 = vsel %vm120_vm1, %v147_v9, -1e+30 }
  0x9b   : > { %v150_v11 = vsel %vm149_vm2, %v148_v10, -inf }
  0x9c   : > { %151 = vmax.xlane.f32.xlu0 %v150_v11 }
  0x9f   : > { %v145_v12 = vpop.f32.mrf.mxu0 }
  0xb0   : > { %193 = vrot.lane.b32.xlu0 %v124_v1, %s510_s14 }
 0x102   : > { %v356_v33 = vpop.f32.mrf.mxu0 }
 0x103   : > { %v360_v34 = vmul.f32 0.17677669, %v356_v33 }
 0x105   : > { %v361_v35 = vsel %vm120_vm1, %v360_v34, -1e+30 }
 0x106   : > { %v362_v36 = vsel %vm149_vm2, %v361_v35, -inf }
 0x10a   : > { %v358_v37 = vpop.f32.mrf.mxu0 }
 0x10f   : > { %v152_v15 = vpop.xlane.xlu0 %151 }
 0x110   : > { %v153_v16 = vsub.f32 %v148_v10, %v152_v15 }
 0x112   : > { %v154_v17 = vmul.f32 1.442695, %v153_v16 }
 0x114   : > { %484 = vpow2.f32 %v154_v17 }
 0x11a   : > { %v485_v20 = vpop.eup %484 }
 0x11b   : > { %v156_v21 = vsel %vm149_vm2, %v485_v20, 0.0 }
 0x11c   : > { %157 = vadd.xlane.f32.xlu1 %v156_v21 }
 0x122   : > { %v194_v27 = vpop.permute.xlu0 %193 }
 0x123   : > { %v199_v28 = vsel %vm127_vm0, %v194_v27, 0 }
 0x124   : > { %208 = vmatpush.bf16.xpose.msra.mxu2 %v199_v28 }
 0x135   : > { %190 = vrot.lane.b32.xlu1 %v122_v4, %s510_s14 }
 0x15f   : > { %363 = vmax.xlane.f32.xlu1 %v362_v36 }
 0x18f   : > { %v158_v29 = vpop.xlane.xlu1 %157 }
 0x190   : > { %486 = vrcp.f32 %v158_v29 }
 0x196   : > { %v487_v30 = vpop.eup %486 }
 0x197   : > { %v160_v31 = vmul.f32 %v487_v30, %v485_v20 }
 0x199   : > { %v161_v32 = vpack.c.bf16 %v160_v31, %v160_v31 }
 0x19b   : > { %463 = vmatmul.msk.bf16.vlgmr.msra.gmra.mxu1 %vm149_vm2, %v161_v32 }
 0x1a7   : > { %v191_v38 = vpop.permute.xlu1 %190 }
 0x1a8   : > { %464 = vmatmul.msk.bf16.vlgmr.msra.gmra.mxu2 %vm127_vm0, %v191_v38 }
 0x1ab   : > { %466 = vmatmul.msk.bf16.vlgmr.msrb.gmra.mxu1 %vm127_vm0, %v264_v18 }
 0x1d2   : > { %v364_v53 = vpop.xlane.xlu1 %363 }
 0x1d3   : > { %v365_v57 = vsub.f32 %v361_v35, %v364_v53 }
 0x1d5   : > { %v366_v59 = vmul.f32 1.442695, %v365_v57 }
 0x218   : > { %v178_v39 = vpop.f32.mrf.mxu1 }
 0x219   : > { %182 = vst.msk [vmem:[%s575_s18] sm:$0xff] %vm127_vm0, %v178_v39 }
 0x220   : > { %v180_v40 = vpop.f32.mrf.mxu1 }
 0x228   : > { %v283_v41 = vpop.f32.mrf.mxu1 }
 0x229   : > { %v287_v42 = vmul.f32 0.17677669, %v283_v41 }
 0x22b   : > { %v210_v43 = vpop.f32.mrf.mxu2  ;;  %v288_v44 = vsel %vm120_vm1, %v287_v42, -1e+30 }
 0x22c   : > { %v214_v45 = vmul.f32 0.17677669, %v210_v43  ;;  %v289_v46 = vsel %vm149_vm2, %v288_v44, -inf }
 0x22d   : > { %290 = vmax.xlane.f32.xlu2 %v289_v46 }
 0x22e   : > { %v215_v47 = vsel %vm120_vm1, %v214_v45, -1e+30 }
 0x22f   : > { %v216_v48 = vsel %vm149_vm2, %v215_v47, -inf }
 0x230   : > { %v285_v49 = vpop.f32.mrf.mxu1  ;;  %217 = vmax.xlane.f32.xlu0 %v216_v48 }
 0x233   : > { %v212_v50 = vpop.f32.mrf.mxu2 }
 0x245   : > { %229 = vrot.lane.b32.xlu2 %v126_v24, %s510_s14 }
 0x2a0   : > { %v291_v51 = vpop.xlane.xlu2 %290 }
 0x2a1   : > { %v292_v52 = vsub.f32 %v288_v44, %v291_v51 }
 0x2a3   : > { %v293_v54 = vmul.f32 1.442695, %v292_v52  ;;  %v218_v55 = vpop.xlane.xlu0 %217 }
 0x2a4   : > { %v219_v56 = vsub.f32 %v215_v47, %v218_v55 }
 0x2a5   : > { %488 = vpow2.f32 %v293_v54 }
 0x2a6   : > { %v220_v58 = vmul.f32 1.442695, %v219_v56 }
 0x2a8   : > { %490 = vpow2.f32 %v220_v58  ;;  %v230_v2 = vpop.permute.xlu2 %229 }
 0x2a9   : > { %492 = vpow2.f32 %v366_v59  ;;  %v235_v3 = vsel %vm165_vm3, %v230_v2, 0 }
 0x2aa   : > { %244 = vmatpush.bf16.msra.mxu3 %v235_v3 }
 0x2ab   : > { %v489_v60 = vpop.eup %488 }
 0x2ac   : > { %v295_v61 = vsel %vm149_vm2, %v489_v60, 0.0 }
 0x2ad   : > { %296 = vadd.xlane.f32.xlu1 %v295_v61 }
 0x2ae   : > { %v491_v62 = vpop.eup %490 }
 0x2af   : > { %v222_v63 = vsel %vm149_vm2, %v491_v62, 0.0  ;;  %v493_v0 = vpop.eup %492 }
 0x2b0   : > { %223 = vadd.xlane.f32.xlu0 %v222_v63  ;;  %v368_v1 = vsel %vm149_vm2, %v493_v0, 0.0 }
 0x2b8   : > { %369 = vadd.xlane.f32.xlu0 %v368_v1 }
 0x2c6   : > { %302 = vrot.lane.b32.xlu1 %v126_v24, %s508_s12 }
 0x2cc   : > { %375 = vrot.lane.b32.xlu0 %v126_v24, %s509_s13 }
 0x320   : > { %v297_v7 = vpop.xlane.xlu1 %296 }
 0x323   : > { %v224_v4 = vpop.xlane.xlu0 %223 }
 0x324   : > { %494 = vrcp.f32 %v224_v4 }
 0x325   : > { %496 = vrcp.f32 %v297_v7 }
 0x32a   : > { %v495_v5 = vpop.eup %494 }
 0x32b   : > { %v226_v6 = vmul.f32 %v495_v5, %v491_v62  ;;  %v370_v9 = vpop.xlane.xlu0 %369  ;;  %v497_v10 = vpop.eup %496 }
 0x32c   : > { %498 = vrcp.f32 %v370_v9  ;;  %v299_v12 = vmul.f32 %v497_v10, %v489_v60 }
 0x32d   : > { %v227_v8 = vpack.c.bf16 %v226_v6, %v226_v6 }
 0x32e   : > { %v300_v16 = vpack.c.bf16 %v299_v12, %v299_v12 }
 0x32f   : > { %465 = vmatmul.msk.bf16.vlgmr.msra.gmra.mxu3 %vm149_vm2, %v227_v8 }
 0x332   : > { %v499_v14 = vpop.eup %498 }
 0x333   : > { %v372_v15 = vmul.f32 %v499_v14, %v493_v0 }
 0x335   : > { %v373_v19 = vpack.c.bf16 %v372_v15, %v372_v15 }
 0x338   : > { %v303_v11 = vpop.permute.xlu1 %302 }
 0x339   : > { %v308_v13 = vsel %vm165_vm3, %v303_v11, 0 }
 0x33a   : > { %317 = vmatpush.bf16.msrb.mxu3 %v308_v13 }
 0x33e   : > { %v376_v17 = vpop.permute.xlu0 %375 }
 0x33f   : > { %467 = vmatmul.msk.bf16.vlgmr.msrb.gmra.mxu3 %vm149_vm2, %v300_v16  ;;  %v381_v18 = vsel %vm165_vm3, %v376_v17, 0 }
 0x340   : > { %390 = vmatpush.bf16.msrb.mxu2 %v381_v18 }
 0x343   : > { %469 = vmatmul.msk.bf16.vlgmr.msrb.gmra.mxu2 %vm149_vm2, %v373_v19 }
 0x3b2   : > { %v246_v20 = vpop.f32.mrf.mxu3 }
 0x3b3   : > { %251 = vrot.lane.b32.xlu2 %v246_v20, %s509_s13 }
 0x3ba   : > { %v248_v21 = vpop.f32.mrf.mxu3 }
 0x3c2   : > { %v319_v22 = vpop.f32.mrf.mxu3 }
 0x3c3   : > { %324 = vrot.lane.b32.xlu2 %v319_v22, %s508_s12 }
 0x3c6   : > { %v392_v23 = vpop.f32.mrf.mxu2 }
 0x3c7   : > { %397 = vrot.lane.b32.xlu0 %v392_v23, %s510_s14 }
 0x3ca   : > { %v321_v24 = vpop.f32.mrf.mxu3 }
 0x3ce   : > { %v394_v25 = vpop.f32.mrf.mxu2 }
 0x40d   : > { %v252_v26 = vpop.permute.xlu2 %251 }
 0x40e   : > { %255 = vst.msk [vmem:[%s575_s18] sm:$0xff] %vm254_vm4, %v252_v26 }
 0x41d   : > { %v325_v27 = vpop.permute.xlu2 %324 }
 0x41e   : > { %328 = vst.msk [vmem:[%s575_s18] sm:$0xff] %vm327_vm5, %v325_v27 }
 0x439   : > { %v398_v28 = vpop.permute.xlu0 %397 }
 0x43a   : > { %401 = vst.msk [vmem:[%s575_s18] sm:$0xff] %vm400_vm6, %v398_v28 }
 0x43b PF: > { %s11_s6 = sadd.s32 1, %s506_s6  }
 0x43c   : > { %p8_p4 = scmp.ge.s32.totalorder %s11_s6, 4  }
 0x43e   :  { %10 = sbr.rel (!%p8_p4) target bundleno = 1 (0x1), region = 54 }

// kernel: gpt_forward.21
= control target key start
LH: loop header
LB: loop body
LE: loop exit
PB: predicated region body
PF: predicated region fallthrough
CT: control target
= control target key end

     0   :  { %v332_v2 = vmov 128.0   ;;  %s430_s0 = inlined_call_operand.vmem [shape: f32[16,128], index: 0, kind: input, shape index: {}]   ;;  %s431_s3 = inlined_call_operand.vmem [shape: bf16[256,128], index: 3, kind: input, shape index: {}]   ;;  %s432_s1 = inlined_call_operand.vmem [shape: f32[1,128], index: 1, kind: input, shape index: {}]   ;;  %s433_s2 = inlined_call_operand.vmem [shape: f32[1,128], index: 2, kind: input, shape index: {}]   ;;  %s434_s4 = inlined_call_operand.vmem [shape: f32[16,256], index: 4, kind: output, shape index: {}]  }
   0x1   :  { %v17_v0 = vld [vmem:[%s430_s0] sm:$0xff]  ;;  %v18_v1 = vld [vmem:[%s430_s0 + $0x8] sm:$0xff]  ;;  %326 = vrcp.f32 %v332_v2  ;;  %v314_v5 = vld [vmem:[%s431_s3 + $0x38] sm:$0xff] }
   0x2   :  { %19 = vadd.xlane.f32.xlu0 %v17_v0  ;;  %v322_v6 = vld [vmem:[%s431_s3 + $0x78] sm:$0xff]  ;;  %207 = vmatpush.bf16.xpose.msra.mxu0 %v314_v5  ;;  %v313_v8 = vld [vmem:[%s431_s3 + $0x30] sm:$0xff]  ;;  %v312_v12 = vld [vmem:[%s431_s3 + $0x28] sm:$0xff] }
   0x3   :  { %221 = vmatpush.bf16.xpose.msra.mxu1 %v322_v6  ;;  %v321_v9 = vld [vmem:[%s431_s3 + $0x70] sm:$0xff]  ;;  %v320_v13 = vld [vmem:[%s431_s3 + $0x68] sm:$0xff]  ;;  %v311_v19 = vld [vmem:[%s431_s3 + $0x20] sm:$0xff] }
   0x4   :  { %v319_v20 = vld [vmem:[%s431_s3 + $0x60] sm:$0xff]  ;;  %v310_v25 = vld [vmem:[%s431_s3 + $0x18] sm:$0xff]  ;;  %v309_v27 = vld [vmem:[%s431_s3 + $0x10] sm:$0xff] }
   0x5   :  { %v318_v26 = vld [vmem:[%s431_s3 + $0x58] sm:$0xff]  ;;  %v317_v28 = vld [vmem:[%s431_s3 + $0x50] sm:$0xff]  ;;  %v308_v29 = vld [vmem:[%s431_s3 + $0x8] sm:$0xff] }
   0x6   :  { %v316_v30 = vld [vmem:[%s431_s3 + $0x48] sm:$0xff]  ;;  %v307_v31 = vld [vmem:[%s431_s3] sm:$0xff] }
   0x7   :  { %v327_v3 = vpop.eup %326  ;;  %v315_v32 = vld [vmem:[%s431_s3 + $0x40] sm:$0xff] }
   0x8   :  { %v24_v4 = vmul.f32 128.0, %v327_v3  ;;  %vm28_vm0 = vweird.f32 %v327_v3  ;;  %v324_v52 = vld [vmem:[%s432_s1] ss:$0 sm:$0xff] }
   0x9   :  { %v325_v57 = vld [vmem:[%s433_s2] ss:$0 sm:$0xff] }
   0xa   :  { %21 = vadd.xlane.f32.xlu0 %v18_v1  ;;  %v25_v7 = vsub.f32 1.0, %v24_v4  ;;  %208 = vmatpush.bf16.xpose.msra.mxu0 %v313_v8 }
   0xb   :  { %222 = vmatpush.bf16.xpose.msra.mxu1 %v321_v9 }
   0xc   :  { %v26_v10 = vmul.f32 %v327_v3, %v25_v7 }
   0xe   :  { %v27_v11 = vadd.f32 %v327_v3, %v26_v10 }
  0x10   :  { %v29_v14 = vsel %vm28_vm0, %v327_v3, %v27_v11 }
  0x12   :  { %209 = vmatpush.bf16.xpose.msra.mxu0 %v312_v12 }
  0x13   :  { %223 = vmatpush.bf16.xpose.msra.mxu1 %v320_v13 }
  0x1a   :  { %210 = vmatpush.bf16.xpose.msra.mxu0 %v311_v19 }
  0x1b   :  { %224 = vmatpush.bf16.xpose.msra.mxu1 %v319_v20 }
  0x22   :  { %211 = vmatpush.bf16.xpose.msra.mxu0 %v310_v25 }
  0x23   :  { %225 = vmatpush.bf16.xpose.msra.mxu1 %v318_v26 }
  0x2a   :  { %212 = vmatpush.bf16.xpose.msra.mxu0 %v309_v27 }
  0x2b   :  { %226 = vmatpush.bf16.xpose.msra.mxu1 %v317_v28 }
  0x32   :  { %213 = vmatpush.bf16.xpose.msra.mxu0 %v308_v29 }
  0x33   :  { %227 = vmatpush.bf16.xpose.msra.mxu1 %v316_v30 }
  0x3a   :  { %214 = vmatpush.bf16.xpose.msra.mxu0 %v307_v31 }
  0x3b   :  { %228 = vmatpush.bf16.xpose.msra.mxu1 %v315_v32 }
  0x75   :  { %v20_v15 = vpop.xlane.xlu0 %19 }
  0x76   :  { %v30_v16 = vmul.f32 %v29_v14, %v20_v15 }
  0x78   :  { %v32_v17 = vsub.f32 %v17_v0, %v30_v16 }
  0x7a   :  { %v34_v18 = vmul.f32 %v32_v17, %v32_v17 }
  0x7c   :  { %36 = vadd.xlane.f32.xlu1 %v34_v18 }
  0x7d   :  { %v22_v21 = vpop.xlane.xlu0 %21 }
  0x7e   :  { %v31_v22 = vmul.f32 %v29_v14, %v22_v21 }
  0x80   :  { %v33_v23 = vsub.f32 %v18_v1, %v31_v22 }
  0x82   :  { %v35_v24 = vmul.f32 %v33_v23, %v33_v23 }
  0x84   :  { %38 = vadd.xlane.f32.xlu1 %v35_v24 }
  0xef   :  { %v37_v33 = vpop.xlane.xlu1 %36 }
  0xf0   :  { %v40_v34 = vmul.f32 %v37_v33, %v29_v14 }
  0xf2   :  { %v42_v35 = vadd.f32 1e-05, %v40_v34 }
  0xf4   :  { %328 = vrsqrt.f32 %v42_v35  ;;  %vm50_vm2 = vweird.f32 %v42_v35 }
  0xf7   :  { %v39_v36 = vpop.xlane.xlu1 %38 }
  0xf8   :  { %v41_v37 = vmul.f32 %v39_v36, %v29_v14 }
  0xfa   :  { %v329_v38 = vpop.eup %328  ;;  %v43_v39 = vadd.f32 1e-05, %v41_v37 }
  0xfb   :  { %v45_v40 = vmul.f32 %v329_v38, %v42_v35  ;;  %vm51_vm1 = vweird.f32 %v329_v38 }
  0xfc   :  { %330 = vrsqrt.f32 %v43_v39  ;;  %vm52_vm3 = vmor %vm50_vm2, %vm51_vm1  ;;  %vm60_vm5 = vweird.f32 %v43_v39 }
  0xfd   :  { %v46_v41 = vmul.f32 %v329_v38, %v45_v40 }
  0xff   :  { %v47_v42 = vmul.f32 0.5, %v46_v41 }
 0x101   :  { %v48_v43 = vsub.f32 1.5, %v47_v42 }
 0x102   :  { %v331_v44 = vpop.eup %330 }
 0x103   :  { %v49_v45 = vmul.f32 %v329_v38, %v48_v43  ;;  %v55_v46 = vmul.f32 %v331_v44, %v43_v39  ;;  %vm61_vm4 = vweird.f32 %v331_v44 }
 0x104   :  { %vm62_vm6 = vmor %vm60_vm5, %vm61_vm4 }
 0x105   :  { %v56_v47 = vmul.f32 %v331_v44, %v55_v46  ;;  %v53_v49 = vsel %vm52_vm3, %v329_v38, %v49_v45 }
 0x106   :  { %v64_v51 = vmul.f32 %v53_v49, %v32_v17 }
 0x107   :  { %v57_v48 = vmul.f32 0.5, %v56_v47 }
 0x108   :  { %v70_v56 = vmul.f32 %v324_v52, %v64_v51 }
 0x109   :  { %v58_v50 = vsub.f32 1.5, %v57_v48 }
 0x10a   :  { %v76_v59 = vadd.f32 %v325_v57, %v70_v56 }
 0x10b   :  { %v59_v53 = vmul.f32 %v331_v44, %v58_v50 }
 0x10d   :  { %v63_v54 = vsel %vm62_vm6, %v331_v44, %v59_v53 }
 0x10e   :  { %v65_v55 = vmul.f32 %v63_v54, %v33_v23 }
 0x110   :  { %v71_v58 = vmul.f32 %v324_v52, %v65_v55 }
 0x112   :  { %v77_v60 = vadd.f32 %v325_v57, %v71_v58 }
 0x114   :  { %v78_v61 = vpack.c.bf16 %v77_v60, %v76_v59 }
 0x116   :  { %215 = vmatmul.bf16.vlgmr.msra.gmra.mxu0 %v78_v61  ;;  %229 = vmatmul.bf16.vlgmr.msra.gmra.mxu1 %v78_v61 }
 0x193   :  { %v216_v62 = vpop.f32.mrf.mxu0  ;;  %v230_v63 = vpop.f32.mrf.mxu1 }
 0x194   :  { %235 = vst [vmem:[%s434_s4] sm:$0xff] %v216_v62 }
 0x195   :  { %236 = vst [vmem:[%s434_s4 + $0x8] sm:$0xff] %v230_v63 }
 0x19b   :  { %v218_v0 = vpop.f32.mrf.mxu0  ;;  %v232_v1 = vpop.f32.mrf.mxu1 }
 0x19c   :  { %237 = vst [vmem:[%s434_s4 + $0x10] sm:$0xff] %v218_v0 }
 0x19d   :  { %238 = vst [vmem:[%s434_s4 + $0x18] sm:$0xff] %v232_v1 }

// kernel: gpt_forward.20
= control target key start
LH: loop header
LB: loop body
LE: loop exit
PB: predicated region body
PF: predicated region fallthrough
CT: control target
= control target key end

     0   :  { %9 = vsyncpa [#allocation3], 0  ;;  %s562_s18 = smov [#allocation2]   ;;  %s563_s20 = smov 64   ;;  %s632_s0 = inlined_call_operand.vmem [shape: f32[16,512], index: 0, kind: input, shape index: {}]   ;;  %s633_s1 = inlined_call_operand.hbm [shape: bf16[512,128], index: 1, kind: input, shape index: {}]   ;;  %s634_s2 = inlined_call_operand.vmem [shape: f32[1,128], index: 2, kind: input, shape index: {}]   ;;  %s635_s3 = inlined_call_operand.vmem [shape: f32[16,128], index: 3, kind: input, shape index: {}]   ;;  %s636_s4 = inlined_call_operand.vmem [shape: f32[16,128], index: 4, kind: output, shape index: {}]  }
   0x1   :  { %s16_s17 = sshll.u32 %s633_s1, 4  ;;  %s18_s19 = sshll.u32 %s562_s18, 4  ;;  %s17_s17 = int_to_ptr.hbm [resolvable:$true] %s16_s17  ;;  %s19_s19 = int_to_ptr.vmem [resolvable:$true] %s18_s19 }
   0x2   :  { %s564_s21 = smov 4  }
   0x3   :  { %24 = dma.hbm_to_vmem [thread:$0]  %s17_s17, 4096, %s19_s19, [#allocation3], %s563_s20, %s563_s20, %s564_s21  }
   0x4   :  { %560 = dma.done.wait [#allocation3], 4096  }
   0x5   :  { %561 = vsyncadd [#allocation3], 4294963200  ;;  %v507_v0 = vld [vmem:[#allocation2 + $0x38] sm:$0xff]  ;;  %v506_v4 = vld [vmem:[#allocation2 + $0x30] sm:$0xff] }
   0x6   :  { %v515_v1 = vld [vmem:[#allocation2 + $0x78] sm:$0xff]  ;;  %305 = vmatpush.bf16.msra.mxu0 %v507_v0  ;;  %v514_v5 = vld [vmem:[#allocation2 + $0x70] sm:$0xff]  ;;  %v505_v8 = vld [vmem:[#allocation2 + $0x28] sm:$0xff] }
   0x7   :  { %v523_v2 = vld [vmem:[#allocation2 + $0xb8] sm:$0xff]  ;;  %319 = vmatpush.bf16.msra.mxu1 %v515_v1  ;;  %v522_v6 = vld [vmem:[#allocation2 + $0xb0] sm:$0xff]  ;;  %v513_v9 = vld [vmem:[#allocation2 + $0x68] sm:$0xff] }
   0x8   :  { %v531_v3 = vld [vmem:[#allocation2 + $0xf8] sm:$0xff]  ;;  %333 = vmatpush.bf16.msra.mxu2 %v523_v2  ;;  %v530_v7 = vld [vmem:[#allocation2 + $0xf0] sm:$0xff]  ;;  %v521_v10 = vld [vmem:[#allocation2 + $0xa8] sm:$0xff] }
   0x9   :  { %347 = vmatpush.bf16.msra.mxu3 %v531_v3  ;;  %v529_v11 = vld [vmem:[#allocation2 + $0xe8] sm:$0xff]  ;;  %v504_v12 = vld [vmem:[#allocation2 + $0x20] sm:$0xff]  ;;  %v503_v16 = vld [vmem:[#allocation2 + $0x18] sm:$0xff] }
   0xa   :  { %306 = vmatpush.bf16.msra.mxu0 %v506_v4  ;;  %v512_v13 = vld [vmem:[#allocation2 + $0x60] sm:$0xff]  ;;  %v511_v17 = vld [vmem:[#allocation2 + $0x58] sm:$0xff]  ;;  %v502_v20 = vld [vmem:[#allocation2 + $0x10] sm:$0xff] }
   0xb   :  { %320 = vmatpush.bf16.msra.mxu1 %v514_v5  ;;  %v520_v14 = vld [vmem:[#allocation2 + $0xa0] sm:$0xff]  ;;  %v519_v18 = vld [vmem:[#allocation2 + $0x98] sm:$0xff]  ;;  %v510_v21 = vld [vmem:[#allocation2 + $0x50] sm:$0xff] }
   0xc   :  { %334 = vmatpush.bf16.msra.mxu2 %v522_v6  ;;  %v528_v15 = vld [vmem:[#allocation2 + $0xe0] sm:$0xff]  ;;  %v527_v19 = vld [vmem:[#allocation2 + $0xd8] sm:$0xff]  ;;  %v518_v22 = vld [vmem:[#allocation2 + $0x90] sm:$0xff] }
   0xd   :  { %348 = vmatpush.bf16.msra.mxu3 %v530_v7  ;;  %v526_v23 = vld [vmem:[#allocation2 + $0xd0] sm:$0xff]  ;;  %v501_v24 = vld [vmem:[#allocation2 + $0x8] sm:$0xff]  ;;  %v500_v28 = vld [vmem:[#allocation2] sm:$0xff] }
   0xe   :  { %307 = vmatpush.bf16.msra.mxu0 %v505_v8  ;;  %v509_v25 = vld [vmem:[#allocation2 + $0x48] sm:$0xff]  ;;  %v508_v29 = vld [vmem:[#allocation2 + $0x40] sm:$0xff]  ;;  %v35_v36 = vld [vmem:[%s632_s0 + $0x10] sm:$0xff] }
   0xf   :  { %321 = vmatpush.bf16.msra.mxu1 %v513_v9  ;;  %v517_v26 = vld [vmem:[#allocation2 + $0x88] sm:$0xff]  ;;  %v516_v30 = vld [vmem:[#allocation2 + $0x80] sm:$0xff]  ;;  %v39_v37 = vld [vmem:[%s632_s0 + $0x30] sm:$0xff] }
  0x10   :  { %335 = vmatpush.bf16.msra.mxu2 %v521_v10  ;;  %v525_v27 = vld [vmem:[#allocation2 + $0xc8] sm:$0xff]  ;;  %v524_v31 = vld [vmem:[#allocation2 + $0xc0] sm:$0xff]  ;;  %v36_v38 = vld [vmem:[%s632_s0 + $0x18] sm:$0xff]  ;;  %v43_v42 = vpack.c.bf16 %v39_v37, %v35_v36 }
  0x11   :  { %349 = vmatpush.bf16.msra.mxu3 %v529_v11  ;;  %v33_v32 = vld [vmem:[%s632_s0] sm:$0xff]  ;;  %v34_v34 = vld [vmem:[%s632_s0 + $0x8] sm:$0xff]  ;;  %v40_v39 = vld [vmem:[%s632_s0 + $0x38] sm:$0xff] }
  0x12   :  { %308 = vmatpush.bf16.msra.mxu0 %v504_v12  ;;  %v37_v33 = vld [vmem:[%s632_s0 + $0x20] sm:$0xff]  ;;  %v38_v35 = vld [vmem:[%s632_s0 + $0x28] sm:$0xff]  ;;  %v44_v43 = vpack.c.bf16 %v40_v39, %v36_v38 }
  0x13   :  { %322 = vmatpush.bf16.msra.mxu1 %v512_v13  ;;  %v41_v40 = vpack.c.bf16 %v37_v33, %v33_v32  ;;  %v42_v41 = vpack.c.bf16 %v38_v35, %v34_v34  ;;  %v535_v44 = vld [vmem:[%s634_s2] ss:$0 sm:$0xff]  ;;  %v362_v62 = vld [vmem:[%s635_s3 + $0x8] sm:$0xff] }
  0x14   :  { %336 = vmatpush.bf16.msra.mxu2 %v520_v14  ;;  %v361_v53 = vld [vmem:[%s635_s3] sm:$0xff] }
  0x15   :  { %350 = vmatpush.bf16.msra.mxu3 %v528_v15 }
  0x16   :  { %309 = vmatpush.bf16.msra.mxu0 %v503_v16 }
  0x17   :  { %323 = vmatpush.bf16.msra.mxu1 %v511_v17 }
  0x18   :  { %337 = vmatpush.bf16.msra.mxu2 %v519_v18 }
  0x19   :  { %351 = vmatpush.bf16.msra.mxu3 %v527_v19 }
  0x1a   :  { %310 = vmatpush.bf16.msra.mxu0 %v502_v20 }
  0x1b   :  { %324 = vmatpush.bf16.msra.mxu1 %v510_v21 }
  0x1c   :  { %338 = vmatpush.bf16.msra.mxu2 %v518_v22 }
  0x1d   :  { %352 = vmatpush.bf16.msra.mxu3 %v526_v23 }
  0x1e   :  { %311 = vmatpush.bf16.msra.mxu0 %v501_v24 }
  0x1f   :  { %325 = vmatpush.bf16.msra.mxu1 %v509_v25 }
  0x20   :  { %339 = vmatpush.bf16.msra.mxu2 %v517_v26 }
  0x21   :  { %353 = vmatpush.bf16.msra.mxu3 %v525_v27 }
  0x22   :  { %312 = vmatpush.bf16.msra.mxu0 %v500_v28 }
  0x23   :  { %326 = vmatpush.bf16.msra.mxu1 %v508_v29 }
  0x24   :  { %340 = vmatpush.bf16.msra.mxu2 %v516_v30 }
  0x25   :  { %354 = vmatpush.bf16.msra.mxu3 %v524_v31  ;;  %313 = vmatmul.bf16.vlgmr.msra.gmra.mxu0 %v41_v40 }
  0x26   :  { %327 = vmatmul.bf16.vlgmr.msra.gmra.mxu1 %v42_v41 }
  0x27   :  { %341 = vmatmul.bf16.vlgmr.msra.gmra.mxu2 %v43_v42 }
  0x28   :  { %355 = vmatmul.bf16.vlgmr.msra.gmra.mxu3 %v44_v43 }
  0xa2   :  { %v314_v45 = vpop.f32.mrf.mxu0 }
  0xa3   :  { %v315_v46 = vadd.f32 %v535_v44, %v314_v45  ;;  %v328_v47 = vpop.f32.mrf.mxu1 }
  0xa5   :  { %v329_v48 = vadd.f32 %v328_v47, %v315_v46 }
  0xaa   :  { %v342_v49 = vpop.f32.mrf.mxu2  ;;  %v316_v52 = vpop.f32.mrf.mxu0 }
  0xab   :  { %v356_v50 = vpop.f32.mrf.mxu3  ;;  %v343_v51 = vadd.f32 %v342_v49, %v329_v48  ;;  %v317_v55 = vadd.f32 %v535_v44, %v316_v52  ;;  %v330_v57 = vpop.f32.mrf.mxu1 }
  0xad   :  { %v357_v54 = vadd.f32 %v356_v50, %v343_v51  ;;  %v331_v58 = vadd.f32 %v330_v57, %v317_v55 }
  0xaf   :  { %v363_v56 = vadd.f32 %v361_v53, %v357_v54 }
  0xb1   :  { %365 = vst [vmem:[%s636_s4] sm:$0xff] %v363_v56 }
  0xb2   :  { %v344_v59 = vpop.f32.mrf.mxu2 }
  0xb3   :  { %v345_v60 = vadd.f32 %v344_v59, %v331_v58  ;;  %v358_v61 = vpop.f32.mrf.mxu3 }
  0xb5   :  { %v359_v63 = vadd.f32 %v358_v61, %v345_v60 }
  0xb7   :  { %v364_v0 = vadd.f32 %v362_v62, %v359_v63 }
  0xb9   :  { %366 = vst [vmem:[%s636_s4 + $0x8] sm:$0xff] %v364_v0 }
  0xba   :  { %371 = vsyncpa [#allocation3], 1 }

// kernel: gpt_forward.15
= control target key start
LH: loop header
LB: loop body
LE: loop exit
PB: predicated region body
PF: predicated region fallthrough
CT: control target
= control target key end

     0   :  { %9 = vsyncpa [#allocation3], 0  ;;  %s675_s0 = inlined_call_operand.vmem [shape: f32[16,512], index: 0, kind: input, shape index: {}]   ;;  %s676_s1 = inlined_call_operand.hbm [shape: bf16[512,128], index: 1, kind: input, shape index: {}]   ;;  %s677_s2 = inlined_call_operand.hbm [shape: f32[1,128], index: 2, kind: input, shape index: {}]   ;;  %s678_s3 = inlined_call_operand.vmem [shape: f32[16,128], index: 3, kind: input, shape index: {}]   ;;  %s679_s4 = inlined_call_operand.vmem [shape: f32[16,128], index: 4, kind: output, shape index: {}]  }
   0x1   :  { %s17_s17 = sshll.u32 %s676_s1, 4  ;;  %s18_s17 = int_to_ptr.hbm [resolvable:$true] %s17_s17 }
   0x2   :  { %10 = vsyncpa [#allocation5], 0  ;;  %s604_s18 = smov [#allocation2]   ;;  %s31_s22 = sshll.u32 %s677_s2, 4  ;;  %s32_s22 = int_to_ptr.hbm [resolvable:$true] %s31_s22 }
   0x3   :  { %s19_s19 = sshll.u32 %s604_s18, 4  ;;  %s605_s23 = smov 64   ;;  %s20_s19 = int_to_ptr.vmem [resolvable:$true] %s19_s19 }
   0x4   :  { %s606_s24 = smov 4   ;;  %s607_s25 = smov [#allocation4]  }
   0x5   :  { %25 = dma.hbm_to_vmem [thread:$0]  %s18_s17, 4096, %s20_s19, [#allocation3], %s605_s23, %s605_s23, %s606_s24  }
   0x6   :  { %s33_s26 = sshll.u32 %s607_s25, 4  ;;  %s34_s26 = int_to_ptr.vmem [resolvable:$true] %s33_s26 }
   0x7   :  { %36 = dma.hbm_to_vmem [thread:$0]  %s32_s22, 16, %s34_s26, [#allocation5]  }
   0x8   :  { %600 = dma.done.wait [#allocation3], 4096  }
   0x9   :  { %601 = vsyncadd [#allocation3], 4294963200 }
   0xa   :  { %602 = dma.done.wait [#allocation5], 16  }
   0xb   :  { %603 = vsyncadd [#allocation5], 4294967280  ;;  %v522_v0 = vld [vmem:[#allocation2 + $0x38] sm:$0xff]  ;;  %v521_v4 = vld [vmem:[#allocation2 + $0x30] sm:$0xff] }
   0xc   :  { %v530_v1 = vld [vmem:[#allocation2 + $0x78] sm:$0xff]  ;;  %319 = vmatpush.bf16.msra.mxu0 %v522_v0  ;;  %v529_v5 = vld [vmem:[#allocation2 + $0x70] sm:$0xff]  ;;  %v520_v8 = vld [vmem:[#allocation2 + $0x28] sm:$0xff] }
   0xd   :  { %v538_v2 = vld [vmem:[#allocation2 + $0xb8] sm:$0xff]  ;;  %333 = vmatpush.bf16.msra.mxu1 %v530_v1  ;;  %v537_v6 = vld [vmem:[#allocation2 + $0xb0] sm:$0xff]  ;;  %v528_v9 = vld [vmem:[#allocation2 + $0x68] sm:$0xff] }
   0xe   :  { %v546_v3 = vld [vmem:[#allocation2 + $0xf8] sm:$0xff]  ;;  %347 = vmatpush.bf16.msra.mxu2 %v538_v2  ;;  %v545_v7 = vld [vmem:[#allocation2 + $0xf0] sm:$0xff]  ;;  %v536_v10 = vld [vmem:[#allocation2 + $0xa8] sm:$0xff] }
   0xf   :  { %361 = vmatpush.bf16.msra.mxu3 %v546_v3  ;;  %v544_v11 = vld [vmem:[#allocation2 + $0xe8] sm:$0xff]  ;;  %v519_v12 = vld [vmem:[#allocation2 + $0x20] sm:$0xff]  ;;  %v518_v16 = vld [vmem:[#allocation2 + $0x18] sm:$0xff] }
  0x10   :  { %320 = vmatpush.bf16.msra.mxu0 %v521_v4  ;;  %v527_v13 = vld [vmem:[#allocation2 + $0x60] sm:$0xff]  ;;  %v526_v17 = vld [vmem:[#allocation2 + $0x58] sm:$0xff]  ;;  %v517_v20 = vld [vmem:[#allocation2 + $0x10] sm:$0xff] }
  0x11   :  { %334 = vmatpush.bf16.msra.mxu1 %v529_v5  ;;  %v535_v14 = vld [vmem:[#allocation2 + $0xa0] sm:$0xff]  ;;  %v534_v18 = vld [vmem:[#allocation2 + $0x98] sm:$0xff]  ;;  %v525_v21 = vld [vmem:[#allocation2 + $0x50] sm:$0xff] }
  0x12   :  { %348 = vmatpush.bf16.msra.mxu2 %v537_v6  ;;  %v543_v15 = vld [vmem:[#allocation2 + $0xe0] sm:$0xff]  ;;  %v542_v19 = vld [vmem:[#allocation2 + $0xd8] sm:$0xff]  ;;  %v533_v22 = vld [vmem:[#allocation2 + $0x90] sm:$0xff] }
  0x13   :  { %362 = vmatpush.bf16.msra.mxu3 %v545_v7  ;;  %v541_v23 = vld [vmem:[#allocation2 + $0xd0] sm:$0xff]  ;;  %v516_v24 = vld [vmem:[#allocation2 + $0x8] sm:$0xff]  ;;  %v515_v28 = vld [vmem:[#allocation2] sm:$0xff] }
  0x14   :  { %321 = vmatpush.bf16.msra.mxu0 %v520_v8  ;;  %v524_v25 = vld [vmem:[#allocation2 + $0x48] sm:$0xff]  ;;  %v523_v29 = vld [vmem:[#allocation2 + $0x40] sm:$0xff]  ;;  %v49_v36 = vld [vmem:[%s675_s0 + $0x10] sm:$0xff] }
  0x15   :  { %335 = vmatpush.bf16.msra.mxu1 %v528_v9  ;;  %v532_v26 = vld [vmem:[#allocation2 + $0x88] sm:$0xff]  ;;  %v531_v30 = vld [vmem:[#allocation2 + $0x80] sm:$0xff]  ;;  %v53_v37 = vld [vmem:[%s675_s0 + $0x30] sm:$0xff] }
  0x16   :  { %349 = vmatpush.bf16.msra.mxu2 %v536_v10  ;;  %v540_v27 = vld [vmem:[#allocation2 + $0xc8] sm:$0xff]  ;;  %v539_v31 = vld [vmem:[#allocation2 + $0xc0] sm:$0xff]  ;;  %v50_v38 = vld [vmem:[%s675_s0 + $0x18] sm:$0xff]  ;;  %v57_v42 = vpack.c.bf16 %v53_v37, %v49_v36 }
  0x17   :  { %363 = vmatpush.bf16.msra.mxu3 %v544_v11  ;;  %v47_v32 = vld [vmem:[%s675_s0] sm:$0xff]  ;;  %v48_v34 = vld [vmem:[%s675_s0 + $0x8] sm:$0xff]  ;;  %v54_v39 = vld [vmem:[%s675_s0 + $0x38] sm:$0xff] }
  0x18   :  { %322 = vmatpush.bf16.msra.mxu0 %v519_v12  ;;  %v51_v33 = vld [vmem:[%s675_s0 + $0x20] sm:$0xff]  ;;  %v52_v35 = vld [vmem:[%s675_s0 + $0x28] sm:$0xff]  ;;  %v58_v43 = vpack.c.bf16 %v54_v39, %v50_v38 }
  0x19   :  { %336 = vmatpush.bf16.msra.mxu1 %v527_v13  ;;  %v55_v40 = vpack.c.bf16 %v51_v33, %v47_v32  ;;  %v56_v41 = vpack.c.bf16 %v52_v35, %v48_v34  ;;  %v551_v44 = vld [vmem:[#allocation4] ss:$0 sm:$0xff]  ;;  %v376_v62 = vld [vmem:[%s678_s3 + $0x8] sm:$0xff] }
  0x1a   :  { %350 = vmatpush.bf16.msra.mxu2 %v535_v14  ;;  %v375_v53 = vld [vmem:[%s678_s3] sm:$0xff] }
  0x1b   :  { %364 = vmatpush.bf16.msra.mxu3 %v543_v15 }
  0x1c   :  { %323 = vmatpush.bf16.msra.mxu0 %v518_v16 }
  0x1d   :  { %337 = vmatpush.bf16.msra.mxu1 %v526_v17 }
  0x1e   :  { %351 = vmatpush.bf16.msra.mxu2 %v534_v18 }
  0x1f   :  { %365 = vmatpush.bf16.msra.mxu3 %v542_v19 }
  0x20   :  { %324 = vmatpush.bf16.msra.mxu0 %v517_v20 }
  0x21   :  { %338 = vmatpush.bf16.msra.mxu1 %v525_v21 }
  0x22   :  { %352 = vmatpush.bf16.msra.mxu2 %v533_v22 }
  0x23   :  { %366 = vmatpush.bf16.msra.mxu3 %v541_v23 }
  0x24   :  { %325 = vmatpush.bf16.msra.mxu0 %v516_v24 }
  0x25   :  { %339 = vmatpush.bf16.msra.mxu1 %v524_v25 }
  0x26   :  { %353 = vmatpush.bf16.msra.mxu2 %v532_v26 }
  0x27   :  { %367 = vmatpush.bf16.msra.mxu3 %v540_v27 }
  0x28   :  { %326 = vmatpush.bf16.msra.mxu0 %v515_v28 }
  0x29   :  { %340 = vmatpush.bf16.msra.mxu1 %v523_v29 }
  0x2a   :  { %354 = vmatpush.bf16.msra.mxu2 %v531_v30 }
  0x2b   :  { %368 = vmatpush.bf16.msra.mxu3 %v539_v31  ;;  %327 = vmatmul.bf16.vlgmr.msra.gmra.mxu0 %v55_v40 }
  0x2c   :  { %341 = vmatmul.bf16.vlgmr.msra.gmra.mxu1 %v56_v41 }
  0x2d   :  { %355 = vmatmul.bf16.vlgmr.msra.gmra.mxu2 %v57_v42 }
  0x2e   :  { %369 = vmatmul.bf16.vlgmr.msra.gmra.mxu3 %v58_v43 }
  0xa8   :  { %v328_v45 = vpop.f32.mrf.mxu0 }
  0xa9   :  { %v329_v46 = vadd.f32 %v551_v44, %v328_v45  ;;  %v342_v47 = vpop.f32.mrf.mxu1 }
  0xab   :  { %v343_v48 = vadd.f32 %v342_v47, %v329_v46 }
  0xb0   :  { %v356_v49 = vpop.f32.mrf.mxu2  ;;  %v330_v52 = vpop.f32.mrf.mxu0 }
  0xb1   :  { %v370_v50 = vpop.f32.mrf.mxu3  ;;  %v357_v51 = vadd.f32 %v356_v49, %v343_v48  ;;  %v331_v55 = vadd.f32 %v551_v44, %v330_v52  ;;  %v344_v57 = vpop.f32.mrf.mxu1 }
  0xb3   :  { %v371_v54 = vadd.f32 %v370_v50, %v357_v51  ;;  %v345_v58 = vadd.f32 %v344_v57, %v331_v55 }
  0xb5   :  { %v377_v56 = vadd.f32 %v375_v53, %v371_v54 }
  0xb7   :  { %379 = vst [vmem:[%s679_s4] sm:$0xff] %v377_v56 }
  0xb8   :  { %v358_v59 = vpop.f32.mrf.mxu2 }
  0xb9   :  { %v359_v60 = vadd.f32 %v358_v59, %v345_v58  ;;  %v372_v61 = vpop.f32.mrf.mxu3 }
  0xbb   :  { %v373_v63 = vadd.f32 %v372_v61, %v359_v60 }
  0xbd   :  { %v378_v0 = vadd.f32 %v376_v62, %v373_v63 }
  0xbf   :  { %380 = vst [vmem:[%s679_s4 + $0x8] sm:$0xff] %v378_v0 }
  0xc0   :  { %385 = vsyncpa [#allocation3], 1 }
  0xc1   :  { %386 = vsyncpa [#allocation5], 1 }

</bundles_post_ra>
